<compile_context>
chip_gen: v7x
topology: tpu7x:2x2x1
jax: 0.10.0
libtpu: 0.0.40
codegen_flags: <defaults>
</compile_context>

<pallas_src>
import functools

import jax
import jax.numpy as jnp
from jax.experimental import pallas as pl
from jax.experimental.pallas import tpu as pltpu


# ---------------------------------------------------------------------------
# Kernel helpers
# ---------------------------------------------------------------------------
def _conv1_bn_relu_pack(x_val, w1, s1, b1):
    """conv1(1x1) + bn1 + relu, then stack the (j-1, j, j+1) column taps along
    the channel axis:  out[r, j, dw*C + c] = h1[r, j + dw - 1, c]
    (zero outside the image, i.e. Conv2d padding=1 applied AFTER bn1+relu)."""
    rows, W, _ = x_val.shape
    cmid = w1.shape[1]
    a1 = jnp.einsum("hwc,cd->hwd", x_val, w1,
                    preferred_element_type=jnp.float32)
    act = jnp.maximum(a1 * s1 + b1, 0.0)                       # (rows, W, C) f32
    zc = jnp.zeros((rows, 1, cmid), jnp.float32)
    left = jnp.concatenate([zc, act[:, :W - 1, :]], axis=1)    # column j-1
    right = jnp.concatenate([act[:, 1:, :], zc], axis=1)       # column j+1
    return jnp.concatenate([left, act, right], axis=-1).astype(jnp.bfloat16)


def _bottleneck_band_kernel(*refs, multi_band):
    """One (batch, row-band) grid step of the fused Bottleneck block."""
    if multi_band:
        (x_ref, x_hbm, w1_ref, s1_ref, b1_ref, w2_ref, s2_ref, b2_ref,
         w3_ref, s3_ref, b3_ref, o_ref, h1c_ref, xh_ref, sem) = refs
    else:
        (x_ref, w1_ref, s1_ref, b1_ref, w2_ref, s2_ref, b2_ref,
         w3_ref, s3_ref, b3_ref, o_ref, h1c_ref) = refs

    th, W, _ = x_ref.shape
    cmid = w1_ref.shape[1]
    f32 = jnp.float32
    bf16 = jnp.bfloat16

    if multi_band:
        n = pl.program_id(0)
        band = pl.program_id(1)
        nbands = pl.num_programs(1)
        r0 = band * th
        has_top = band > 0
        has_bot = band < nbands - 1

        # Kick off halo-row DMAs early so they overlap the main conv1 matmul.
        @pl.when(has_top)
        def _():
            pltpu.make_async_copy(x_hbm.at[n, pl.ds(r0 - 1, 1)],
                                  xh_ref.at[pl.ds(0, 1)], sem.at[0]).start()

        @pl.when(has_bot)
        def _():
            pltpu.make_async_copy(x_hbm.at[n, pl.ds(r0 + th, 1)],
                                  xh_ref.at[pl.ds(1, 1)], sem.at[1]).start()

    w1 = w1_ref[...]
    s1 = s1_ref[...]
    b1 = b1_ref[...]

    # ---- conv1 (1x1) + bn1 + relu + column-tap pack on the main band -------
    xb = x_ref[...]                                          # (th, W, Cin) bf16
    h1c_ref[1:th + 1, :, :] = _conv1_bn_relu_pack(xb, w1, s1, b1)

    # ---- boundary / halo rows of the padded h1 ------------------------------
    zrow = jnp.zeros((1, W, 3 * cmid), bf16)
    if multi_band:
        @pl.when(band == 0)
        def _():
            h1c_ref[0:1, :, :] = zrow

        @pl.when(band == nbands - 1)
        def _():
            h1c_ref[th + 1:th + 2, :, :] = zrow

        # TODO(synk): when both halos exist they could be a single (2*W, Cin)
        # matmul; kept per-row since this path is cold (whole-image bands).
        @pl.when(has_top)
        def _():
            pltpu.make_async_copy(x_hbm.at[n, pl.ds(r0 - 1, 1)],
                                  xh_ref.at[pl.ds(0, 1)], sem.at[0]).wait()
            h1c_ref[0:1, :, :] = _conv1_bn_relu_pack(
                xh_ref[0:1, :, :], w1, s1, b1)

        @pl.when(has_bot)
        def _():
            pltpu.make_async_copy(x_hbm.at[n, pl.ds(r0 + th, 1)],
                                  xh_ref.at[pl.ds(1, 1)], sem.at[1]).wait()
            h1c_ref[th + 1:th + 2, :, :] = _conv1_bn_relu_pack(
                xh_ref[1:2, :, :], w1, s1, b1)
    else:
        h1c_ref[0:1, :, :] = zrow
        h1c_ref[th + 1:th + 2, :, :] = zrow

    # ---- conv2 (3x3, pad=1) + bn2 + relu: 3 row-sliced matmuls, K = 3*Cmid --
    a2 = jnp.einsum("hwk,ko->hwo", h1c_ref[0:th, :, :], w2_ref[0],
                    preferred_element_type=f32)
    a2 = a2 + jnp.einsum("hwk,ko->hwo", h1c_ref[1:th + 1, :, :], w2_ref[1],
                         preferred_element_type=f32)
    a2 = a2 + jnp.einsum("hwk,ko->hwo", h1c_ref[2:th + 2, :, :], w2_ref[2],
                         preferred_element_type=f32)
    h2 = jnp.maximum(a2 * s2_ref[...] + b2_ref[...], 0.0).astype(bf16)

    # ---- conv3 (1x1) + bn3 + identity residual + relu ----------------------
    a3 = jnp.einsum("hwc,co->hwo", h2, w3_ref[...],
                    preferred_element_type=f32)
    out = a3 * s3_ref[...] + b3_ref[...] + xb.astype(f32)
    o_ref[...] = jnp.maximum(out, 0.0).astype(o_ref.dtype)


# ---------------------------------------------------------------------------
# Band selection (VMEM-budget driven)
# ---------------------------------------------------------------------------
def _vmem_band_estimate(th, W, cin, cmid, cout):
    bf, f4 = 2, 4
    x_band = 2 * th * W * cin * bf              # double-buffered input band
    o_band = 2 * th * W * cout * bf             # double-buffered output band
    h1c = (th + 2) * W * 3 * cmid * bf          # packed h1 scratch
    f32_tmp = th * W * (6 * cmid + cout) * f4   # conv results / pack temporaries
    weights = 2 * (cin * cmid + 9 * cmid * cmid + cmid * cout) * bf
    return x_band + o_band + h1c + f32_tmp + weights


def _pick_band_rows(H, W, cin, cmid, cout, budget_bytes, max_band_rows=None):
    divs = [d for d in range(1, H + 1) if H % d == 0]
    if max_band_rows is not None:
        divs = [d for d in divs if d <= max_band_rows] or divs[:1]
    fitting = [d for d in divs
               if _vmem_band_estimate(d, W, cin, cmid, cout) <= budget_bytes]
    # Largest band that fits the budget (whole image for every standard
    # ResNet Bottleneck stage); otherwise the smallest available divisor.
    # TODO(synk): ragged last band (masked) so awkward H never degrades to
    #             single-row bands.
    return max(fitting) if fitting else divs[0]


# ---------------------------------------------------------------------------
# Bottleneck forward (wrapper).  PyTorch layout is NCHW; the kernel runs in
# NHWC (channels on lanes).  Returns bf16 NCHW.
# ---------------------------------------------------------------------------
def bottleneck_forward(x_nchw, params, *, max_band_rows=None,
                       vmem_budget_bytes=20 * 1024 * 1024):
    w1, s1, b1, w2, s2, b2, w3, s3, b3 = params
    N, Cin, H, W = x_nchw.shape
    width = w1.shape[1]
    Cout = w3.shape[1]
    # TODO(synk): stride / downsample residual branch not implemented.
    assert Cin == Cout, "identity residual requires inplanes == planes*expansion"

    th = _pick_band_rows(H, W, Cin, width, Cout, vmem_budget_bytes,
                         max_band_rows)
    nbands = H // th
    multi_band = nbands > 1

    # bf16 BEFORE the layout transpose (halves the transpose HBM traffic).
    x = jnp.transpose(x_nchw.astype(jnp.bfloat16), (0, 2, 3, 1))
    w1b = w1.astype(jnp.bfloat16)                                 # (Cin, width)
    w2b = w2.reshape(3, 3 * width, width).astype(jnp.bfloat16)    # (dh, 3C, C)
    w3b = w3.astype(jnp.bfloat16)                                 # (width, Cout)
    s1r, b1r = s1.reshape(1, width), b1.reshape(1, width)
    s2r, b2r = s2.reshape(1, width), b2.reshape(1, width)
    s3r, b3r = s3.reshape(1, Cout), b3.reshape(1, Cout)

    kernel = functools.partial(_bottleneck_band_kernel, multi_band=multi_band)

    in_specs = [pl.BlockSpec((None, th, W, Cin), lambda n, i: (n, i, 0, 0))]
    args = [x]
    if multi_band:
        in_specs.append(pl.BlockSpec(memory_space=pl.ANY))  # raw x for halo DMA
        args.append(x)
    in_specs += [
        pl.BlockSpec((Cin, width), lambda n, i: (0, 0)),
        pl.BlockSpec((1, width), lambda n, i: (0, 0)),
        pl.BlockSpec((1, width), lambda n, i: (0, 0)),
        pl.BlockSpec((3, 3 * width, width), lambda n, i: (0, 0, 0)),
        pl.BlockSpec((1, width), lambda n, i: (0, 0)),
        pl.BlockSpec((1, width), lambda n, i: (0, 0)),
        pl.BlockSpec((width, Cout), lambda n, i: (0, 0)),
        pl.BlockSpec((1, Cout), lambda n, i: (0, 0)),
        pl.BlockSpec((1, Cout), lambda n, i: (0, 0)),
    ]
    args += [w1b, s1r, b1r, w2b, s2r, b2r, w3b, s3r, b3r]

    scratch_shapes = [pltpu.VMEM((th + 2, W, 3 * width), jnp.bfloat16)]
    if multi_band:
        scratch_shapes += [pltpu.VMEM((2, W, Cin), jnp.bfloat16),
                           pltpu.SemaphoreType.DMA((2,))]

    out = pl.pallas_call(
        kernel,
        out_shape=jax.ShapeDtypeStruct((N, H, W, Cout), jnp.bfloat16),
        grid_spec=pltpu.PrefetchScalarGridSpec(
            num_scalar_prefetch=0,
            grid=(N, nbands),
            in_specs=in_specs,
            out_specs=pl.BlockSpec((None, th, W, Cout),
                                   lambda n, i: (n, i, 0, 0)),
            scratch_shapes=scratch_shapes,
        ),
        compiler_params=pltpu.CompilerParams(
            dimension_semantics=("parallel", "parallel"),
            vmem_limit_bytes=40 * 1024 * 1024),
    )(*args)

    # NHWC -> NCHW (bf16) to match the PyTorch output layout.
    return jnp.transpose(out, (0, 3, 1, 2))


# ---------------------------------------------------------------------------
# Deterministic parameters and a pure-JAX (XLA) reference with the same
# bf16-in / f32-accumulate recipe.
# ---------------------------------------------------------------------------
def make_params(key, inplanes, planes, expansion=4):
    width = planes  # base_width=64, groups=1
    out_c = planes * expansion
    ks = jax.random.split(key, 9)

    def bn(k, c):
        k1, k2, k3, k4 = jax.random.split(k, 4)
        gamma = jax.random.uniform(k1, (c,), minval=0.5, maxval=1.5)
        beta = jax.random.uniform(k2, (c,), minval=-0.1, maxval=0.1)
        mean = jax.random.uniform(k3, (c,), minval=-0.1, maxval=0.1)
        var = jax.random.uniform(k4, (c,), minval=0.5, maxval=1.5)
        scale = gamma / jnp.sqrt(var + 1e-5)
        bias = beta - mean * scale
        return scale.astype(jnp.float32), bias.astype(jnp.float32)

    w1 = (jax.random.normal(ks[0], (inplanes, width)) * 0.1).astype(jnp.float32)
    w2 = (jax.random.normal(ks[1], (3, 3, width, width)) * 0.1).astype(jnp.float32)  # HWIO
    w3 = (jax.random.normal(ks[2], (width, out_c)) * 0.1).astype(jnp.float32)
    s1, b1 = bn(ks[3], width)
    s2, b2 = bn(ks[4], width)
    s3, b3 = bn(ks[5], out_c)
    return (w1, s1, b1, w2, s2, b2, w3, s3, b3)


def reference_forward(x_nchw, params):
    w1, s1, b1, w2, s2, b2, w3, s3, b3 = params
    dn = ("NHWC", "HWIO", "NHWC")
    bf16, f32 = jnp.bfloat16, jnp.float32
    x = jnp.transpose(x_nchw.astype(bf16), (0, 2, 3, 1))
    h = jax.lax.conv_general_dilated(
        x, w1[None, None].astype(bf16), (1, 1), "VALID",
        dimension_numbers=dn, preferred_element_type=f32)
    h = jnp.maximum(h * s1 + b1, 0.0)
    h = jax.lax.conv_general_dilated(
        h.astype(bf16), w2.astype(bf16), (1, 1), ((1, 1), (1, 1)),
        dimension_numbers=dn, preferred_element_type=f32)
    h = jnp.maximum(h * s2 + b2, 0.0)
    h = jax.lax.conv_general_dilated(
        h.astype(bf16), w3[None, None].astype(bf16), (1, 1), "VALID",
        dimension_numbers=dn, preferred_element_type=f32)
    h = jnp.maximum(h * s3 + b3 + x.astype(f32), 0.0)
    return jnp.transpose(h.astype(bf16), (0, 3, 1, 2))


if __name__ == "__main__":
    key = jax.random.PRNGKey(0)
    k_x, k_p = jax.random.split(key)

    # Small shapes consistent with the module: downsample=None requires
    # inplanes == planes * expansion.
    N, H, W = 2, 16, 16
    planes = 4
    inplanes = planes * 4  # = 16

    x = jax.random.normal(k_x, (N, inplanes, H, W), jnp.float32)  # NCHW input
    params = make_params(k_p, inplanes, planes)

    ref = jax.block_until_ready(reference_forward(x, params))
    ref32 = ref.astype(jnp.float32)

    def rel_err(o):
        o32 = o.astype(jnp.float32)
        return float(jnp.max(jnp.abs(o32 - ref32) / (1.0 + jnp.abs(ref32))))

    # Fast path: whole-image band (grid = (N, 1)), no halo DMAs.
    fwd = jax.jit(bottleneck_forward)
    out = jax.block_until_ready(fwd(x, params))
    assert out.shape == (N, inplanes, H, W)
    e0 = rel_err(out)
    assert e0 < 2e-2, e0

    # Fallback path: multi-band with halo DMAs (exercised explicitly).
    fwd_mb = jax.jit(functools.partial(bottleneck_forward, max_band_rows=8))
    out_mb = jax.block_until_ready(fwd_mb(x, params))
    e1 = rel_err(out_mb)
    assert e1 < 2e-2, e1

    print("KERNEL_OK")
</pallas_src>

<mosaic_0001>
module attributes {stable_mosaic.version = 11 : i64} {
  func.func @_bottleneck_band_kernel(%arg0: i32, %arg1: i32, %arg2: memref<1x16x16x16xbf16, #tpu.memory_space<vmem>>, %arg3: memref<16x4xbf16, #tpu.memory_space<vmem>>, %arg4: memref<1x4xf32, #tpu.memory_space<vmem>>, %arg5: memref<1x4xf32, #tpu.memory_space<vmem>>, %arg6: memref<3x12x4xbf16, #tpu.memory_space<vmem>>, %arg7: memref<1x4xf32, #tpu.memory_space<vmem>>, %arg8: memref<1x4xf32, #tpu.memory_space<vmem>>, %arg9: memref<4x16xbf16, #tpu.memory_space<vmem>>, %arg10: memref<1x16xf32, #tpu.memory_space<vmem>>, %arg11: memref<1x16xf32, #tpu.memory_space<vmem>>, %arg12: memref<1x16x16x16xbf16, #tpu.memory_space<vmem>>, %arg13: memref<18x16x12xbf16, #tpu.memory_space<vmem>>) attributes {dimension_semantics = [#tpu.dimension_semantics<parallel>, #tpu.dimension_semantics<parallel>], iteration_bounds = array<i64: 2, 1>, scalar_prefetch = 0 : i64, scratch_operands = 1 : i64, tpu.core_type = #tpu.core_type<tc>, window_params = [{transform_indices = @transform_0, window_bounds = array<i64: 1, 16, 16, 16>}, {pipeline_mode = #tpu.pipeline_mode<synchronous>, transform_indices = @transform_1, window_bounds = array<i64: 16, 4>}, {pipeline_mode = #tpu.pipeline_mode<synchronous>, transform_indices = @transform_2, window_bounds = array<i64: 1, 4>}, {pipeline_mode = #tpu.pipeline_mode<synchronous>, transform_indices = @transform_3, window_bounds = array<i64: 1, 4>}, {pipeline_mode = #tpu.pipeline_mode<synchronous>, transform_indices = @transform_4, window_bounds = array<i64: 3, 12, 4>}, {pipeline_mode = #tpu.pipeline_mode<synchronous>, transform_indices = @transform_5, window_bounds = array<i64: 1, 4>}, {pipeline_mode = #tpu.pipeline_mode<synchronous>, transform_indices = @transform_6, window_bounds = array<i64: 1, 4>}, {pipeline_mode = #tpu.pipeline_mode<synchronous>, transform_indices = @transform_7, window_bounds = array<i64: 4, 16>}, {pipeline_mode = #tpu.pipeline_mode<synchronous>, transform_indices = @transform_8, window_bounds = array<i64: 1, 16>}, {pipeline_mode = #tpu.pipeline_mode<synchronous>, transform_indices = @transform_9, window_bounds = array<i64: 1, 16>}, {transform_indices = @transform_10, window_bounds = array<i64: 1, 16, 16, 16>}]} {
    %c0 = arith.constant 0 : index
    %c0_0 = arith.constant 0 : index
    %0 = vector.load %arg3[%c0, %c0_0] : memref<16x4xbf16, #tpu.memory_space<vmem>>, vector<16x4xbf16>
    %c0_1 = arith.constant 0 : index
    %c0_2 = arith.constant 0 : index
    %1 = vector.load %arg4[%c0_1, %c0_2] : memref<1x4xf32, #tpu.memory_space<vmem>>, vector<1x4xf32>
    %c0_3 = arith.constant 0 : index
    %c0_4 = arith.constant 0 : index
    %2 = vector.load %arg5[%c0_3, %c0_4] : memref<1x4xf32, #tpu.memory_space<vmem>>, vector<1x4xf32>
    %c0_5 = arith.constant 0 : index
    %c0_6 = arith.constant 0 : index
    %c0_7 = arith.constant 0 : index
    %c0_8 = arith.constant 0 : index
    %3 = vector.load %arg2[%c0_5, %c0_6, %c0_7, %c0_8] : memref<1x16x16x16xbf16, #tpu.memory_space<vmem>>, vector<1x16x16x16xbf16>
    %4 = vector.shape_cast %3 : vector<1x16x16x16xbf16> to vector<16x16x16xbf16>
    "tpu.trace_start"() <{level = 10 : i32, message = "hwc,cd->hwd"}> : () -> ()
    %cst = arith.constant dense<0.000000e+00> : vector<16x16x4xf32>
    %5 = tpu.matmul %4, %0, %cst {dimension_numbers = #tpu.dot_dimension_numbers<[2], [0], [0, 1], [1], [0, 0, 0, 1, 1, 1], [], []>} : vector<16x16x16xbf16>, vector<16x4xbf16>, vector<16x16x4xf32> -> vector<16x16x4xf32>
    "tpu.trace_stop"() : () -> ()
    %6 = vector.shape_cast %1 : vector<1x4xf32> to vector<1x1x4xf32>
    %7 = vector.broadcast %6 : vector<1x1x4xf32> to vector<16x16x4xf32>
    %8 = arith.mulf %5, %7 : vector<16x16x4xf32>
    %9 = vector.shape_cast %2 : vector<1x4xf32> to vector<1x1x4xf32>
    %10 = vector.broadcast %9 : vector<1x1x4xf32> to vector<16x16x4xf32>
    %11 = arith.addf %8, %10 : vector<16x16x4xf32>
    %cst_9 = arith.constant 0.000000e+00 : f32
    %12 = vector.broadcast %cst_9 : f32 to vector<16x16x4xf32>
    %13 = arith.maximumf %11, %12 : vector<16x16x4xf32>
    %cst_10 = arith.constant 0.000000e+00 : f32
    %14 = vector.broadcast %cst_10 : f32 to vector<16x1x4xf32>
    %15 = vector.extract_strided_slice %13 {offsets = [0, 0, 0], sizes = [16, 15, 4], strides = [1, 1, 1]} : vector<16x16x4xf32> to vector<16x15x4xf32>
    %16 = tpu.concatenate %14, %15 in 1 : vector<16x1x4xf32>, vector<16x15x4xf32> -> vector<16x16x4xf32>
    %17 = vector.extract_strided_slice %13 {offsets = [0, 1, 0], sizes = [16, 15, 4], strides = [1, 1, 1]} : vector<16x16x4xf32> to vector<16x15x4xf32>
    %18 = tpu.concatenate %17, %14 in 1 : vector<16x15x4xf32>, vector<16x1x4xf32> -> vector<16x16x4xf32>
    %19 = tpu.concatenate %16, %13, %18 in 2 : vector<16x16x4xf32>, vector<16x16x4xf32>, vector<16x16x4xf32> -> vector<16x16x12xf32>
    %20 = arith.truncf %19 : vector<16x16x12xf32> to vector<16x16x12xbf16>
    %c1 = arith.constant 1 : index
    %c0_11 = arith.constant 0 : index
    %c0_12 = arith.constant 0 : index
    %21 = vector.load %arg13[%c1, %c0_11, %c0_12] : memref<18x16x12xbf16, #tpu.memory_space<vmem>>, vector<16x16x12xbf16>
    tpu.vector_store %arg13[%c1, %c0_11, %c0_12], %20 {strides = array<i32>} : memref<18x16x12xbf16, #tpu.memory_space<vmem>>, vector<16x16x12xbf16>,
    %cst_13 = arith.constant 0.000000e+00 : bf16
    %22 = vector.broadcast %cst_13 : bf16 to vector<1x16x12xbf16>
    %c0_14 = arith.constant 0 : index
    %c0_15 = arith.constant 0 : index
    %c0_16 = arith.constant 0 : index
    %23 = vector.load %arg13[%c0_14, %c0_15, %c0_16] : memref<18x16x12xbf16, #tpu.memory_space<vmem>>, vector<1x16x12xbf16>
    tpu.vector_store %arg13[%c0_14, %c0_15, %c0_16], %22 {strides = array<i32>} : memref<18x16x12xbf16, #tpu.memory_space<vmem>>, vector<1x16x12xbf16>,
    %c17 = arith.constant 17 : index
    %c0_17 = arith.constant 0 : index
    %c0_18 = arith.constant 0 : index
    %24 = vector.load %arg13[%c17, %c0_17, %c0_18] : memref<18x16x12xbf16, #tpu.memory_space<vmem>>, vector<1x16x12xbf16>
    tpu.vector_store %arg13[%c17, %c0_17, %c0_18], %22 {strides = array<i32>} : memref<18x16x12xbf16, #tpu.memory_space<vmem>>, vector<1x16x12xbf16>,
    %c0_19 = arith.constant 0 : index
    %c0_20 = arith.constant 0 : index
    %c0_21 = arith.constant 0 : index
    %25 = vector.load %arg13[%c0_19, %c0_20, %c0_21] : memref<18x16x12xbf16, #tpu.memory_space<vmem>>, vector<16x16x12xbf16>
    %c0_22 = arith.constant 0 : index
    %c0_23 = arith.constant 0 : index
    %c0_24 = arith.constant 0 : index
    %26 = vector.load %arg6[%c0_22, %c0_23, %c0_24] : memref<3x12x4xbf16, #tpu.memory_space<vmem>>, vector<1x12x4xbf16>
    %27 = vector.shape_cast %26 : vector<1x12x4xbf16> to vector<12x4xbf16>
    "tpu.trace_start"() <{level = 10 : i32, message = "hwk,ko->hwo"}> : () -> ()
    %cst_25 = arith.constant dense<0.000000e+00> : vector<16x16x4xf32>
    %28 = tpu.matmul %25, %27, %cst_25 {dimension_numbers = #tpu.dot_dimension_numbers<[2], [0], [0, 1], [1], [0, 0, 0, 1, 1, 1], [], []>} : vector<16x16x12xbf16>, vector<12x4xbf16>, vector<16x16x4xf32> -> vector<16x16x4xf32>
    "tpu.trace_stop"() : () -> ()
    %c1_26 = arith.constant 1 : index
    %c0_27 = arith.constant 0 : index
    %c0_28 = arith.constant 0 : index
    %29 = vector.load %arg13[%c1_26, %c0_27, %c0_28] : memref<18x16x12xbf16, #tpu.memory_space<vmem>>, vector<16x16x12xbf16>
    %c1_29 = arith.constant 1 : index
    %c0_30 = arith.constant 0 : index
    %c0_31 = arith.constant 0 : index
    %30 = vector.load %arg6[%c1_29, %c0_30, %c0_31] : memref<3x12x4xbf16, #tpu.memory_space<vmem>>, vector<1x12x4xbf16>
    %31 = vector.shape_cast %30 : vector<1x12x4xbf16> to vector<12x4xbf16>
    "tpu.trace_start"() <{level = 10 : i32, message = "hwk,ko->hwo"}> : () -> ()
    %cst_32 = arith.constant dense<0.000000e+00> : vector<16x16x4xf32>
    %32 = tpu.matmul %29, %31, %cst_32 {dimension_numbers = #tpu.dot_dimension_numbers<[2], [0], [0, 1], [1], [0, 0, 0, 1, 1, 1], [], []>} : vector<16x16x12xbf16>, vector<12x4xbf16>, vector<16x16x4xf32> -> vector<16x16x4xf32>
    "tpu.trace_stop"() : () -> ()
    %33 = arith.addf %28, %32 : vector<16x16x4xf32>
    %c2 = arith.constant 2 : index
    %c0_33 = arith.constant 0 : index
    %c0_34 = arith.constant 0 : index
    %34 = vector.load %arg13[%c2, %c0_33, %c0_34] : memref<18x16x12xbf16, #tpu.memory_space<vmem>>, vector<16x16x12xbf16>
    %c2_35 = arith.constant 2 : index
    %c0_36 = arith.constant 0 : index
    %c0_37 = arith.constant 0 : index
    %35 = vector.load %arg6[%c2_35, %c0_36, %c0_37] : memref<3x12x4xbf16, #tpu.memory_space<vmem>>, vector<1x12x4xbf16>
    %36 = vector.shape_cast %35 : vector<1x12x4xbf16> to vector<12x4xbf16>
    "tpu.trace_start"() <{level = 10 : i32, message = "hwk,ko->hwo"}> : () -> ()
    %cst_38 = arith.constant dense<0.000000e+00> : vector<16x16x4xf32>
    %37 = tpu.matmul %34, %36, %cst_38 {dimension_numbers = #tpu.dot_dimension_numbers<[2], [0], [0, 1], [1], [0, 0, 0, 1, 1, 1], [], []>} : vector<16x16x12xbf16>, vector<12x4xbf16>, vector<16x16x4xf32> -> vector<16x16x4xf32>
    "tpu.trace_stop"() : () -> ()
    %38 = arith.addf %33, %37 : vector<16x16x4xf32>
    %c0_39 = arith.constant 0 : index
    %c0_40 = arith.constant 0 : index
    %39 = vector.load %arg7[%c0_39, %c0_40] : memref<1x4xf32, #tpu.memory_space<vmem>>, vector<1x4xf32>
    %40 = vector.shape_cast %39 : vector<1x4xf32> to vector<1x1x4xf32>
    %41 = vector.broadcast %40 : vector<1x1x4xf32> to vector<16x16x4xf32>
    %42 = arith.mulf %38, %41 : vector<16x16x4xf32>
    %c0_41 = arith.constant 0 : index
    %c0_42 = arith.constant 0 : index
    %43 = vector.load %arg8[%c0_41, %c0_42] : memref<1x4xf32, #tpu.memory_space<vmem>>, vector<1x4xf32>
    %44 = vector.shape_cast %43 : vector<1x4xf32> to vector<1x1x4xf32>
    %45 = vector.broadcast %44 : vector<1x1x4xf32> to vector<16x16x4xf32>
    %46 = arith.addf %42, %45 : vector<16x16x4xf32>
    %cst_43 = arith.constant 0.000000e+00 : f32
    %47 = vector.broadcast %cst_43 : f32 to vector<16x16x4xf32>
    %48 = arith.maximumf %46, %47 : vector<16x16x4xf32>
    %49 = arith.truncf %48 : vector<16x16x4xf32> to vector<16x16x4xbf16>
    %c0_44 = arith.constant 0 : index
    %c0_45 = arith.constant 0 : index
    %50 = vector.load %arg9[%c0_44, %c0_45] : memref<4x16xbf16, #tpu.memory_space<vmem>>, vector<4x16xbf16>
    "tpu.trace_start"() <{level = 10 : i32, message = "hwc,co->hwo"}> : () -> ()
    %cst_46 = arith.constant dense<0.000000e+00> : vector<16x16x16xf32>
    %51 = tpu.matmul %49, %50, %cst_46 {dimension_numbers = #tpu.dot_dimension_numbers<[2], [0], [0, 1], [1], [0, 0, 0, 1, 1, 1], [], []>} : vector<16x16x4xbf16>, vector<4x16xbf16>, vector<16x16x16xf32> -> vector<16x16x16xf32>
    "tpu.trace_stop"() : () -> ()
    %c0_47 = arith.constant 0 : index
    %c0_48 = arith.constant 0 : index
    %52 = vector.load %arg10[%c0_47, %c0_48] : memref<1x16xf32, #tpu.memory_space<vmem>>, vector<1x16xf32>
    %53 = vector.shape_cast %52 : vector<1x16xf32> to vector<1x1x16xf32>
    %54 = vector.broadcast %53 : vector<1x1x16xf32> to vector<16x16x16xf32>
    %55 = arith.mulf %51, %54 : vector<16x16x16xf32>
    %c0_49 = arith.constant 0 : index
    %c0_50 = arith.constant 0 : index
    %56 = vector.load %arg11[%c0_49, %c0_50] : memref<1x16xf32, #tpu.memory_space<vmem>>, vector<1x16xf32>
    %57 = vector.shape_cast %56 : vector<1x16xf32> to vector<1x1x16xf32>
    %58 = vector.broadcast %57 : vector<1x1x16xf32> to vector<16x16x16xf32>
    %59 = arith.addf %55, %58 : vector<16x16x16xf32>
    %60 = arith.extf %4 : vector<16x16x16xbf16> to vector<16x16x16xf32>
    %61 = arith.addf %59, %60 : vector<16x16x16xf32>
    %cst_51 = arith.constant 0.000000e+00 : f32
    %62 = vector.broadcast %cst_51 : f32 to vector<16x16x16xf32>
    %63 = arith.maximumf %61, %62 : vector<16x16x16xf32>
    %64 = arith.truncf %63 : vector<16x16x16xf32> to vector<16x16x16xbf16>
    %c0_52 = arith.constant 0 : index
    %c0_53 = arith.constant 0 : index
    %c0_54 = arith.constant 0 : index
    %c0_55 = arith.constant 0 : index
    %65 = vector.load %arg12[%c0_52, %c0_53, %c0_54, %c0_55] : memref<1x16x16x16xbf16, #tpu.memory_space<vmem>>, vector<1x16x16x16xbf16>
    %66 = vector.shape_cast %65 : vector<1x16x16x16xbf16> to vector<16x16x16xbf16>
    %67 = vector.shape_cast %64 : vector<16x16x16xbf16> to vector<1x16x16x16xbf16>
    tpu.vector_store %arg12[%c0_52, %c0_53, %c0_54, %c0_55], %67 {strides = array<i32>} : memref<1x16x16x16xbf16, #tpu.memory_space<vmem>>, vector<1x16x16x16xbf16>,
    return
  }
  func.func @transform_0(%arg0: i32, %arg1: i32) -> (i32, i32, i32, i32) {
    %c0_i32 = arith.constant 0 : i32
    %c0_i32_0 = arith.constant 0 : i32
    %c0_i32_1 = arith.constant 0 : i32
    return %arg0, %arg1, %c0_i32, %c0_i32_0 : i32, i32, i32, i32
  }
  func.func @transform_1(%arg0: i32, %arg1: i32) -> (i32, i32) {
    %c0_i32 = arith.constant 0 : i32
    %c0_i32_0 = arith.constant 0 : i32
    %c0_i32_1 = arith.constant 0 : i32
    return %c0_i32, %c0_i32_0 : i32, i32
  }
  func.func @transform_2(%arg0: i32, %arg1: i32) -> (i32, i32) {
    %c0_i32 = arith.constant 0 : i32
    %c0_i32_0 = arith.constant 0 : i32
    %c0_i32_1 = arith.constant 0 : i32
    return %c0_i32, %c0_i32_0 : i32, i32
  }
  func.func @transform_3(%arg0: i32, %arg1: i32) -> (i32, i32) {
    %c0_i32 = arith.constant 0 : i32
    %c0_i32_0 = arith.constant 0 : i32
    %c0_i32_1 = arith.constant 0 : i32
    return %c0_i32, %c0_i32_0 : i32, i32
  }
  func.func @transform_4(%arg0: i32, %arg1: i32) -> (i32, i32, i32) {
    %c0_i32 = arith.constant 0 : i32
    %c0_i32_0 = arith.constant 0 : i32
    %c0_i32_1 = arith.constant 0 : i32
    %c0_i32_2 = arith.constant 0 : i32
    return %c0_i32, %c0_i32_0, %c0_i32_1 : i32, i32, i32
  }
  func.func @transform_5(%arg0: i32, %arg1: i32) -> (i32, i32) {
    %c0_i32 = arith.constant 0 : i32
    %c0_i32_0 = arith.constant 0 : i32
    %c0_i32_1 = arith.constant 0 : i32
    return %c0_i32, %c0_i32_0 : i32, i32
  }
  func.func @transform_6(%arg0: i32, %arg1: i32) -> (i32, i32) {
    %c0_i32 = arith.constant 0 : i32
    %c0_i32_0 = arith.constant 0 : i32
    %c0_i32_1 = arith.constant 0 : i32
    return %c0_i32, %c0_i32_0 : i32, i32
  }
  func.func @transform_7(%arg0: i32, %arg1: i32) -> (i32, i32) {
    %c0_i32 = arith.constant 0 : i32
    %c0_i32_0 = arith.constant 0 : i32
    %c0_i32_1 = arith.constant 0 : i32
    return %c0_i32, %c0_i32_0 : i32, i32
  }
  func.func @transform_8(%arg0: i32, %arg1: i32) -> (i32, i32) {
    %c0_i32 = arith.constant 0 : i32
    %c0_i32_0 = arith.constant 0 : i32
    %c0_i32_1 = arith.constant 0 : i32
    return %c0_i32, %c0_i32_0 : i32, i32
  }
  func.func @transform_9(%arg0: i32, %arg1: i32) -> (i32, i32) {
    %c0_i32 = arith.constant 0 : i32
    %c0_i32_0 = arith.constant 0 : i32
    %c0_i32_1 = arith.constant 0 : i32
    return %c0_i32, %c0_i32_0 : i32, i32
  }
  func.func @transform_10(%arg0: i32, %arg1: i32) -> (i32, i32, i32, i32) {
    %c0_i32 = arith.constant 0 : i32
    %c0_i32_0 = arith.constant 0 : i32
    %c0_i32_1 = arith.constant 0 : i32
    return %arg0, %arg1, %c0_i32, %c0_i32_0 : i32, i32, i32, i32
  }
}

</mosaic_0001>

<bundles_post_ra>
// kernel: bottleneck_forward.1
= control target key start
LH: loop header
LB: loop body
LE: loop exit
PB: predicated region body
PF: predicated region fallthrough
CT: control target
= control target key end

     0   :  { %s3712_s13 = smov 0   ;;  %s3714_s14 = smov 0   ;;  %s4746_s0 = inlined_call_operand.vmem [shape: bf16[2,16,16,16], index: 0, kind: input, shape index: {}]   ;;  %s4747_s1 = inlined_call_operand.vmem [shape: bf16[16,4], index: 1, kind: input, shape index: {}]   ;;  %s4748_s2 = inlined_call_operand.vmem [shape: f32[1,4], index: 2, kind: input, shape index: {}]   ;;  %s4749_s3 = inlined_call_operand.vmem [shape: f32[1,4], index: 3, kind: input, shape index: {}]   ;;  %s4750_s4 = inlined_call_operand.vmem [shape: bf16[3,12,4], index: 4, kind: input, shape index: {}]   ;;  %s4751_s5 = inlined_call_operand.vmem [shape: f32[1,4], index: 5, kind: input, shape index: {}]   ;;  %s4752_s6 = inlined_call_operand.vmem [shape: f32[1,4], index: 6, kind: input, shape index: {}]   ;;  %s4753_s7 = inlined_call_operand.vmem [shape: bf16[4,16], index: 7, kind: input, shape index: {}]   ;;  %s4754_s8 = inlined_call_operand.vmem [shape: f32[1,16], index: 8, kind: input, shape index: {}]   ;;  %s4755_s9 = inlined_call_operand.vmem [shape: f32[1,16], index: 9, kind: input, shape index: {}]   ;;  %s4756_s10 = inlined_call_operand.vmem [shape: bf16[2,16,16,16], index: 10, kind: output, shape index: {}]  }
   0x1   :  { %s3716_s15 = smov 0  }
   0x2 LB: > { %s32_s16 = sadd.s32 1, %s3648_s14  ;;  %p2882_p0 = scmp.ge.s32.totalorder %s3652_s15, 1  ;;  %s3652_s15 = sphi %s3716_s15, %s20_s15   ;;  %s3648_s14 = sphi %s3714_s14, %s4824_s14   ;;  %s3644_s13 = sphi %s3712_s13, %s4823_s13  }
   0x3   : > { %p34_p1 = scmp.ge.s32.totalorder %s32_s16, 2  ;;  %p334_p2 = scmp.lt.s32.totalorder %s3652_s15, 3 }
   0x5   : > { %s4826_s16 = smov (%p34_p1, %s32_s16), 0  ;;  %p335_p3 = pnand %p2882_p0, %p334_p2 }
   0x7   : > { %338 = sbr.rel (%p335_p3) target bundleno = 1015 (0x3f7), region = 60 }
   0xe   : > { %v3578_v0 = vld [vmem:[%s4747_s1] sm:$0xff]   ;;  %p383_p4 = scmp.lt.s32.totalorder %s3644_s13, 1  ;;  %vm527_vm0 = vcmask 130048   ;;  %vm974_vm1 = vcmask 1046528   ;;  %vm877_vm2 = vcmask 1040384   ;;  %s3654_s27 = smov 4  }
   0xf   : > { %3150 = vmatprep.subr.bf16.mxu0 %v3578_v0  ;;  %v3778_v17 = vld [vmem:[%s4748_s2] ss:$0 sm:$0xff]  ;;  %s3655_s28 = smov 8   ;;  %vm1456_vm3 = vcmask 1045504   ;;  %vm1346_vm4 = vcmask 97280   ;;  %vm1263_vm5 = vcmask 31744  }
  0x10   : > { %s4828_s13 = smov (!%p383_p4, %s3644_s13), 1  ;;  %3151 = vmatpush3.bf16.msra.mxu0 %v3578_v0  ;;  %v3783_v18 = vld [vmem:[%s4749_s3] ss:$0 sm:$0xff]  ;;  %vm1296_vm6 = vcmask 64512   ;;  %vm2282_vm7 = vcmask 1041408   ;;  %vm2749_vm8 = vcmask 125952  }
  0x11   : > { %s3031_s19 = sshll.u32 %s4828_s13, 7 }
  0x12   : > { %s3741_s22 = scalar_lea.vmem %s4746_s0, %s3031_s19  ;;  %s4601_s17 = scalar_lea.vmem %s4756_s10, %s3031_s19 }
  0x13   : > { %v409_v1 = vld [vmem:[%s3741_s22] sm:$0xff]   ;;  %v411_v2 = vld [vmem:[%s3741_s22 + $0x8] sm:$0xff]   ;;  %v413_v3 = vld [vmem:[%s3741_s22 + $0x10] sm:$0xff]  }
  0x14   : > { %3152 = vmatprep.mubr.msk.bf16.mxu0 %vm527_vm0, %v409_v1  ;;  %v415_v4 = vld [vmem:[%s3741_s22 + $0x18] sm:$0xff]   ;;  %v417_v5 = vld [vmem:[%s3741_s22 + $0x20] sm:$0xff]   ;;  %v419_v6 = vld [vmem:[%s3741_s22 + $0x28] sm:$0xff]  }
  0x15   : > { %3153 = vmatmul.mubr.msk.bf16.vlgmr.msra.gmra.mrb[0].mxu0 %vm527_vm0, %v411_v2  ;;  %v421_v7 = vld [vmem:[%s3741_s22 + $0x30] sm:$0xff]   ;;  %v423_v8 = vld [vmem:[%s3741_s22 + $0x38] sm:$0xff]   ;;  %v425_v9 = vld [vmem:[%s3741_s22 + $0x40] sm:$0xff]  }
  0x16   : > { %3156 = vmatprep.mubr.msk.bf16.mxu0 %vm527_vm0, %v413_v3  ;;  %v427_v10 = vld [vmem:[%s3741_s22 + $0x48] sm:$0xff]   ;;  %v429_v11 = vld [vmem:[%s3741_s22 + $0x50] sm:$0xff]   ;;  %v431_v12 = vld [vmem:[%s3741_s22 + $0x58] sm:$0xff]  }
  0x17   : > { %v433_v13 = vld [vmem:[%s3741_s22 + $0x60] sm:$0xff]   ;;  %v435_v14 = vld [vmem:[%s3741_s22 + $0x68] sm:$0xff]   ;;  %v437_v15 = vld [vmem:[%s3741_s22 + $0x70] sm:$0xff]  }
  0x18   : > { %v439_v16 = vld [vmem:[%s3741_s22 + $0x78] sm:$0xff]  }
  0x1d   : > { %3157 = vmatmul.mubr.msk.bf16.gmra.mrb[4].mxu0 %vm527_vm0, %v415_v4 }
  0x1e   : > { %3160 = vmatprep.mubr.msk.bf16.mxu0 %vm527_vm0, %v417_v5 }
  0x25   : > { %3161 = vmatmul.mubr.msk.bf16.gmra.mrb[8].mxu0 %vm527_vm0, %v419_v6 }
  0x26   : > { %3164 = vmatprep.mubr.msk.bf16.mxu0 %vm527_vm0, %v421_v7 }
  0x2d   : > { %3165 = vmatmul.mubr.msk.bf16.gmra.mrb[12].mxu0 %vm527_vm0, %v423_v8 }
  0x2e   : > { %3168 = vmatprep.mubr.msk.bf16.mxu0 %vm527_vm0, %v425_v9 }
  0x35   : > { %3169 = vmatmul.mubr.msk.bf16.gmra.mrb[16].mxu0 %vm527_vm0, %v427_v10 }
  0x36   : > { %3172 = vmatprep.mubr.msk.bf16.mxu0 %vm527_vm0, %v429_v11 }
  0x3d   : > { %3173 = vmatmul.mubr.msk.bf16.gmra.mrb[20].mxu0 %vm527_vm0, %v431_v12 }
  0x3e   : > { %3176 = vmatprep.mubr.msk.bf16.mxu0 %vm527_vm0, %v433_v13 }
  0x45   : > { %3177 = vmatmul.mubr.msk.bf16.gmra.mrb[24].mxu0 %vm527_vm0, %v435_v14 }
  0x46   : > { %3180 = vmatprep.mubr.msk.bf16.mxu0 %vm527_vm0, %v437_v15 }
  0x4d   : > { %3181 = vmatmul.mubr.msk.bf16.gmra.mrb[28].mxu0 %vm527_vm0, %v439_v16 }
  0xe8   : > { %v3154_v19 = vpop.f32.mrb[0].mxu0 }
  0xe9   : > { %v745_v20 = vmul.f32 %v3154_v19, %v3778_v17  ;;  %v610_v21 = vpop.f32.mrb[1].mxu0 }
  0xea   : > { %v743_v22 = vmul.f32 %v3778_v17, %v610_v21  ;;  %v3155_v23 = vpop.f32.mrb[2].mxu0 }
  0xeb   : > { %v783_v24 = vadd.f32 %v3783_v18, %v745_v20  ;;  %v746_v25 = vmul.f32 %v3155_v23, %v3778_v17  ;;  %v613_v26 = vpop.f32.mrb[3].mxu0 }
  0xec   : > { %v781_v27 = vadd.f32 %v3783_v18, %v743_v22  ;;  %v744_v28 = vmul.f32 %v3778_v17, %v613_v26 }
  0xed   : > { %v3791_v29 = vmax.f32 %v783_v24, 0.0  ;;  %v784_v30 = vadd.f32 %v3783_v18, %v746_v25 }
  0xee   : > { %v3794_v31 = vmax.f32 %v781_v27, 0.0  ;;  %v782_v32 = vadd.f32 %v3783_v18, %v744_v28 }
  0xef   : > { %v4761_v33 = vrot.slane %v3791_v29, 7  ;;  %v3798_v34 = vmax.f32 %v784_v30, 0.0  ;;  %v978_v35 = vrot.slane %v3791_v29, 1 }
  0xf0   : > { %v4762_v36 = vrot.slane %v3794_v31, 7  ;;  %v975_v37 = vrot.slane %v3794_v31, 1  ;;  %v3803_v38 = vmax.f32 %v782_v32, 0.0  ;;  %v3158_v39 = vpop.f32.mrb[4].mxu0 }
  0xf1   : > { %v882_v40 = vrot.slane %v3798_v34, 7  ;;  %v749_v41 = vmul.f32 %v3158_v39, %v3778_v17  ;;  %v626_v42 = vpop.f32.mrb[5].mxu0  ;;  %v979_v44 = vrot.slane %v3798_v34, 1 }
  0xf2   : > { %v879_v45 = vrot.slane %v3803_v38, 7  ;;  %v747_v46 = vmul.f32 %v3778_v17, %v626_v42  ;;  %v3159_v47 = vpop.f32.mrb[6].mxu0  ;;  %v976_v49 = vrot.slane %v3803_v38, 1 }
  0xf3   : > { %v787_v50 = vadd.f32 %v3783_v18, %v749_v41  ;;  %v750_v51 = vmul.f32 %v3159_v47, %v3778_v17  ;;  %v629_v52 = vpop.f32.mrb[7].mxu0  ;;  %v3818_v53 = vsel %vm974_vm1, %v978_v35, %v979_v44  ;;  %v3821_v54 = vsel %vm974_vm1, %v979_v44, 0.0 }
  0xf4   : > { %v785_v55 = vadd.f32 %v3783_v18, %v747_v46  ;;  %v748_v56 = vmul.f32 %v3778_v17, %v629_v52  ;;  %v3826_v57 = vsel %vm974_vm1, %v975_v37, %v976_v49  ;;  %v3829_v58 = vsel %vm974_vm1, %v976_v49, 0.0 }
  0xf5   : > { %v3831_v59 = vmax.f32 %v787_v50, 0.0  ;;  %v788_v60 = vadd.f32 %v3783_v18, %v750_v51  ;;  %v3844_v1 = vsel %vm877_vm2, %v4762_v36, %v879_v45  ;;  %v3852_v4 = vsel %vm877_vm2, %v4761_v33, %v882_v40 }
  0xf6   : > { %v3838_v63 = vmax.f32 %v785_v55, 0.0  ;;  %v786_v0 = vadd.f32 %v3783_v18, %v748_v56  ;;  %4766 = vst [vmem:[#allocation3_spill] sm:$0xff] %v3844_v1  ;;  %4767 = vst [vmem:[#allocation4_spill] sm:$0xff] %v3852_v4  ;;  %v3595_v1 = vld [vmem:[%s4750_s4 + $0x8] sm:$0x3f]  }
  0xf7   : > { %v4759_v2 = vrot.slane %v3831_v59, 7  ;;  %v3847_v3 = vmax.f32 %v788_v60, 0.0  ;;  %v984_v5 = vrot.slane %v3831_v59, 1  ;;  %3387 = vmatprep.subr.msk.bf16.mxu1 %vm1456_vm3, %v3595_v1  ;;  %3386 = vmatprep.subr.msk.bf16.mxu0 %vm1456_vm3, %v3595_v1 }
  0xf8   : > { %v4760_v6 = vrot.slane %v3838_v63, 7  ;;  %v981_v7 = vrot.slane %v3838_v63, 1  ;;  %v3857_v8 = vmax.f32 %v786_v0, 0.0  ;;  %v3162_v9 = vpop.f32.mrb[8].mxu0 }
  0xf9   : > { %v888_v10 = vrot.slane %v3847_v3, 7  ;;  %v753_v11 = vmul.f32 %v3162_v9, %v3778_v17  ;;  %v642_v12 = vpop.f32.mrb[9].mxu0  ;;  %v985_v14 = vrot.slane %v3847_v3, 1 }
  0xfa   : > { %v885_v15 = vrot.slane %v3857_v8, 7  ;;  %v751_v16 = vmul.f32 %v3778_v17, %v642_v12  ;;  %v3163_v19 = vpop.f32.mrb[10].mxu0  ;;  %v982_v21 = vrot.slane %v3857_v8, 1 }
  0xfb   : > { %v791_v22 = vadd.f32 %v3783_v18, %v753_v11  ;;  %v754_v23 = vmul.f32 %v3163_v19, %v3778_v17  ;;  %v645_v24 = vpop.f32.mrb[11].mxu0  ;;  %v3872_v25 = vsel %vm974_vm1, %v984_v5, %v985_v14  ;;  %v3875_v26 = vsel %vm974_vm1, %v985_v14, 0.0 }
  0xfc   : > { %v789_v27 = vadd.f32 %v3783_v18, %v751_v16  ;;  %v752_v28 = vmul.f32 %v3778_v17, %v645_v24  ;;  %v3880_v30 = vsel %vm974_vm1, %v981_v7, %v982_v21  ;;  %v3883_v32 = vsel %vm974_vm1, %v982_v21, 0.0 }
  0xfd   : > { %v3885_v35 = vmax.f32 %v791_v22, 0.0  ;;  %v792_v37 = vadd.f32 %v3783_v18, %v754_v23  ;;  %v3898_v44 = vsel %vm877_vm2, %v4760_v6, %v885_v15  ;;  %v3906_v47 = vsel %vm877_vm2, %v4759_v2, %v888_v10 }
  0xfe   : > { %v3892_v41 = vmax.f32 %v789_v27, 0.0  ;;  %v790_v42 = vadd.f32 %v3783_v18, %v752_v28  ;;  %4768 = vst [vmem:[#allocation5_spill] sm:$0xff] %v3898_v44  ;;  %4769 = vst [vmem:[#allocation6_spill] sm:$0xff] %v3906_v47 }
  0xff   : > { %v4757_v45 = vrot.slane %v3885_v35, 7  ;;  %v3901_v46 = vmax.f32 %v792_v37, 0.0  ;;  %v990_v49 = vrot.slane %v3885_v35, 1 }
 0x100   : > { %v4758_v50 = vrot.slane %v3892_v41, 7  ;;  %v987_v51 = vrot.slane %v3892_v41, 1  ;;  %v3911_v52 = vmax.f32 %v790_v42, 0.0  ;;  %v3166_v55 = vpop.f32.mrb[12].mxu0 }
 0x101   : > { %v894_v56 = vrot.slane %v3901_v46, 7  ;;  %v757_v60 = vmul.f32 %v3166_v55, %v3778_v17  ;;  %v658_v0 = vpop.f32.mrb[13].mxu0  ;;  %v991_v7 = vrot.slane %v3901_v46, 1 }
 0x102   : > { %v891_v9 = vrot.slane %v3911_v52, 7  ;;  %v755_v10 = vmul.f32 %v3778_v17, %v658_v0  ;;  %v3167_v11 = vpop.f32.mrb[14].mxu0  ;;  %v988_v14 = vrot.slane %v3911_v52, 1 }
 0x103   : > { %v795_v15 = vadd.f32 %v3783_v18, %v757_v60  ;;  %v758_v16 = vmul.f32 %v3167_v11, %v3778_v17  ;;  %v661_v19 = vpop.f32.mrb[15].mxu0  ;;  %v3926_v21 = vsel %vm974_vm1, %v990_v49, %v991_v7  ;;  %v3929_v22 = vsel %vm974_vm1, %v991_v7, 0.0 }
 0x104   : > { %v793_v23 = vadd.f32 %v3783_v18, %v755_v10  ;;  %v756_v24 = vmul.f32 %v3778_v17, %v661_v19  ;;  %v3934_v27 = vsel %vm974_vm1, %v987_v51, %v988_v14  ;;  %v3937_v28 = vsel %vm974_vm1, %v988_v14, 0.0 }
 0x105   : > { %v3939_v37 = vmax.f32 %v795_v15, 0.0  ;;  %v796_v42 = vadd.f32 %v3783_v18, %v758_v16  ;;  %v3952_v51 = vsel %vm877_vm2, %v4758_v50, %v891_v9  ;;  %v3959_v10 = vsel %vm877_vm2, %v4757_v45, %v894_v56 }
 0x106   : > { %v3946_v60 = vmax.f32 %v793_v23, 0.0  ;;  %v794_v0 = vadd.f32 %v3783_v18, %v756_v24  ;;  %4770 = vst [vmem:[#allocation7_spill] sm:$0xff] %v3952_v51  ;;  %4771 = vst [vmem:[#allocation8_spill] sm:$0xff] %v3959_v10 }
 0x107   : > { %v3954_v7 = vmax.f32 %v796_v42, 0.0  ;;  %v996_v11 = vrot.slane %v3939_v37, 1 }
 0x108   : > { %v4763_v14 = vrot.slane %v3946_v60, 7  ;;  %v3963_v15 = vmax.f32 %v794_v0, 0.0  ;;  %v3170_v16 = vpop.f32.mrb[16].mxu0  ;;  %v993_v19 = vrot.slane %v3946_v60, 1 }
 0x109   : > { %v761_v23 = vmul.f32 %v3170_v16, %v3778_v17  ;;  %v674_v9 = vpop.f32.mrb[17].mxu0  ;;  %v997_v42 = vrot.slane %v3954_v7, 1 }
 0x10a   : > { %v897_v56 = vrot.slane %v3963_v15, 7  ;;  %v759_v45 = vmul.f32 %v3778_v17, %v674_v9  ;;  %v3171_v50 = vpop.f32.mrb[18].mxu0  ;;  %v994_v2 = vrot.slane %v3963_v15, 1 }
 0x10b   : > { %v799_v6 = vadd.f32 %v3783_v18, %v761_v23  ;;  %v762_v16 = vmul.f32 %v3171_v50, %v3778_v17  ;;  %v677_v33 = vpop.f32.mrb[19].mxu0  ;;  %v3978_v36 = vsel %vm974_vm1, %v996_v11, %v997_v42  ;;  %v3981_v24 = vsel %vm974_vm1, %v997_v42, 0.0 }
 0x10c   : > { %v797_v55 = vadd.f32 %v3783_v18, %v759_v45  ;;  %v760_v9 = vmul.f32 %v3778_v17, %v677_v33  ;;  %v3986_v5 = vsel %vm974_vm1, %v993_v19, %v994_v2  ;;  %v3989_v0 = vsel %vm974_vm1, %v994_v2, 0.0 }
 0x10d   : > { %v3991_v23 = vmax.f32 %v799_v6, 0.0  ;;  %v800_v50 = vadd.f32 %v3783_v18, %v762_v16  ;;  %v4005_v2 = vsel %vm877_vm2, %v4763_v14, %v897_v56 }
 0x10e   : > { %v3998_v49 = vmax.f32 %v797_v55, 0.0  ;;  %v798_v33 = vadd.f32 %v3783_v18, %v760_v9  ;;  %4772 = vst [vmem:[#allocation9_spill] sm:$0xff] %v4005_v2 }
 0x10f   : > { %v832_v19 = vmax.f32 %v800_v50, 0.0  ;;  %v1002_v6 = vrot.slane %v3991_v23, 1 }
 0x110   : > { %v830_v11 = vmax.f32 %v798_v33, 0.0  ;;  %v3174_v40 = vpop.f32.mrb[20].mxu0  ;;  %v999_v42 = vrot.slane %v3998_v49, 1 }
 0x111   : > { %v906_v55 = vrot.slane %v832_v19, 7  ;;  %v765_v12 = vmul.f32 %v3174_v40, %v3778_v17  ;;  %v690_v9 = vpop.f32.mrb[21].mxu0  ;;  %v3423_v13 = vpack.i.bf16 %v832_v19, %v3991_v23  ;;  %v1003_v50 = vrot.slane %v832_v19, 1 }
 0x112   : > { %v903_v39 = vrot.slane %v830_v11, 7  ;;  %v763_v62 = vmul.f32 %v3778_v17, %v690_v9  ;;  %v3175_v56 = vpop.f32.mrb[22].mxu0  ;;  %v3418_v14 = vpack.i.bf16 %v830_v11, %v3998_v49  ;;  %v1000_v20 = vrot.slane %v830_v11, 1 }
 0x113   : > { %v803_v43 = vadd.f32 %v3783_v18, %v765_v12  ;;  %v766_v33 = vmul.f32 %v3175_v56, %v3778_v17  ;;  %v693_v61 = vpop.f32.mrb[23].mxu0  ;;  %v1004_v48 = vsel %vm974_vm1, %v1002_v6, %v1003_v50  ;;  %v1048_v40 = vsel %vm974_vm1, %v1003_v50, 0.0 }
 0x114   : > { %v801_v45 = vadd.f32 %v3783_v18, %v763_v62  ;;  %v764_v19 = vmul.f32 %v3778_v17, %v693_v61  ;;  %3419 = vrot.lane.b32.xlu0 %v3418_v14, %s3654_s27  ;;  %v1001_v9 = vsel %vm974_vm1, %v999_v42, %v1000_v20  ;;  %v1047_v11 = vsel %vm974_vm1, %v1000_v20, 0.0 }
 0x115   : > { %v4023_v16 = vmax.f32 %v803_v43, 0.0  ;;  %v804_v12 = vadd.f32 %v3783_v18, %v766_v33  ;;  %v3428_v56 = vpack.i.bf16 %v1047_v11, %v1001_v9  ;;  %v3433_v2 = vpack.i.bf16 %v1048_v40, %v1004_v48 }
 0x116   : > { %v4026_v6 = vmax.f32 %v801_v45, 0.0  ;;  %v802_v50 = vadd.f32 %v3783_v18, %v764_v19  ;;  %v4775_v62 = vrot.slane %v3998_v49, 7  ;;  %v4776_v43 = vrot.slane %v3991_v23, 7 }
 0x117   : > { %4773 = vst [vmem:[#allocation10_spill] sm:$0xff] %v4023_v16  ;;  %v1008_v14 = vrot.slane %v4023_v16, 1  ;;  %v836_v42 = vmax.f32 %v804_v12, 0.0  ;;  %3429 = vrot.lane.b32.xlu1 %v3428_v56, %s3655_s28 }
 0x118   : > { %4774 = vst [vmem:[#allocation11_spill] sm:$0xff] %v4026_v6  ;;  %v4032_v61 = vsel %vm877_vm2, %v4775_v62, %v903_v39  ;;  %v4039_v20 = vsel %vm877_vm2, %v4776_v43, %v906_v55  ;;  %v1005_v33 = vrot.slane %v4026_v6, 1  ;;  %v834_v40 = vmax.f32 %v802_v50, 0.0  ;;  %3424 = vrot.lane.b32.xlu0 %v3423_v13, %s3654_s27  ;;  %v3178_v39 = vpop.f32.mrb[24].mxu0 }
 0x119   : > { %v912_v19 = vrot.slane %v836_v42, 7  ;;  %v769_v9 = vmul.f32 %v3178_v39, %v3778_v17  ;;  %v706_v11 = vpop.f32.mrb[25].mxu0  ;;  %v3438_v12 = vpack.i.bf16 %v836_v42, %v4023_v16  ;;  %v1009_v56 = vrot.slane %v836_v42, 1 }
 0x11a   : > { %v909_v62 = vrot.slane %v834_v40, 7  ;;  %v767_v55 = vmul.f32 %v3778_v17, %v706_v11  ;;  %v3179_v43 = vpop.f32.mrb[26].mxu0  ;;  %v3443_v48 = vpack.i.bf16 %v834_v40, %v4026_v6  ;;  %v1006_v45 = vrot.slane %v834_v40, 1 }
 0x11b   : > { %v807_v10 = vadd.f32 %v3783_v18, %v769_v9  ;;  %v770_v50 = vmul.f32 %v3179_v43, %v3778_v17  ;;  %3434 = vrot.lane.b32.xlu1 %v3433_v2, %s3655_s28  ;;  %v709_v13 = vpop.f32.mrb[27].mxu0  ;;  %v1010_v39 = vsel %vm974_vm1, %v1008_v14, %v1009_v56  ;;  %v1050_v51 = vsel %vm974_vm1, %v1009_v56, 0.0 }
 0x11c   : > { %v805_v42 = vadd.f32 %v3783_v18, %v767_v55  ;;  %v768_v47 = vmul.f32 %v3778_v17, %v709_v13  ;;  %3444 = vrot.lane.b32.xlu0 %v3443_v48, %s3654_s27  ;;  %v1007_v11 = vsel %vm974_vm1, %v1005_v33, %v1006_v45  ;;  %v1049_v40 = vsel %vm974_vm1, %v1006_v45, 0.0 }
 0x11d   : > { %v4059_v9 = vmax.f32 %v807_v10, 0.0  ;;  %v808_v43 = vadd.f32 %v3783_v18, %v770_v50  ;;  %v3453_v2 = vpack.i.bf16 %v1049_v40, %v1007_v11  ;;  %v3448_v44 = vpack.i.bf16 %v1050_v51, %v1010_v39 }
 0x11e   : > { %v4062_v4 = vmax.f32 %v805_v42, 0.0  ;;  %v806_v14 = vadd.f32 %v3783_v18, %v768_v47  ;;  %v4777_v56 = vrot.slane %v4026_v6, 7  ;;  %v4779_v47 = vrot.slane %v4023_v16, 7 }
 0x11f   : > { %v1014_v48 = vrot.slane %v4059_v9, 1  ;;  %v840_v33 = vmax.f32 %v808_v43, 0.0  ;;  %3439 = vrot.lane.b32.xlu1 %v3438_v12, %s3654_s27 }
 0x120   : > { %v4068_v55 = vsel %vm877_vm2, %v4777_v56, %v909_v62  ;;  %v1011_v45 = vrot.slane %v4062_v4, 1  ;;  %v838_v50 = vmax.f32 %v806_v14, 0.0  ;;  %3454 = vrot.lane.b32.xlu0 %v3453_v2, %s3655_s28  ;;  %v3182_v51 = vpop.f32.mrb[28].mxu0  ;;  %v4078_v13 = vsel %vm877_vm2, %v4779_v47, %v912_v19 }
 0x121   : > { %4778 = vst [vmem:[#allocation12_spill] sm:$0xff] %v4068_v55  ;;  %4780 = vst [vmem:[#allocation13_spill] sm:$0xff] %v4078_v13  ;;  %v773_v39 = vmul.f32 %v3182_v51, %v3778_v17  ;;  %v722_v42 = vpop.f32.mrb[29].mxu0  ;;  %v3458_v12 = vpack.i.bf16 %v840_v33, %v4059_v9  ;;  %v1015_v11 = vrot.slane %v840_v33, 1  ;;  %v918_v16 = vrot.slane %v840_v33, 7 }
 0x122   : > { %v915_v40 = vrot.slane %v838_v50, 7  ;;  %v771_v43 = vmul.f32 %v3778_v17, %v722_v42  ;;  %v3183_v14 = vpop.f32.mrb[30].mxu0  ;;  %v3463_v2 = vpack.i.bf16 %v838_v50, %v4062_v4  ;;  %v1012_v56 = vrot.slane %v838_v50, 1 }
 0x123   : > { %v811_v10 = vadd.f32 %v3783_v18, %v773_v39  ;;  %v774_v19 = vmul.f32 %v3183_v14, %v3778_v17  ;;  %3449 = vrot.lane.b32.xlu1 %v3448_v44, %s3655_s28  ;;  %v725_v47 = vpop.f32.mrb[31].mxu0  ;;  %v1016_v51 = vsel %vm974_vm1, %v1014_v48, %v1015_v11  ;;  %v1052_v62 = vsel %vm974_vm1, %v1015_v11, 0.0 }
 0x124   : > { %v809_v42 = vadd.f32 %v3783_v18, %v771_v43  ;;  %v772_v13 = vmul.f32 %v3778_v17, %v725_v47  ;;  %3464 = vrot.lane.b32.xlu0 %v3463_v2, %s3654_s27  ;;  %v1013_v50 = vsel %vm974_vm1, %v1011_v45, %v1012_v56  ;;  %v1051_v39 = vsel %vm974_vm1, %v1012_v56, 0.0  ;;  %v4107_v17 = vld [vmem:[%s4750_s4] sm:$0x3f]  }
 0x125   : > { %v4098_v44 = vmax.f32 %v811_v10, 0.0  ;;  %v812_v48 = vadd.f32 %v3783_v18, %v774_v19  ;;  %v3473_v14 = vpack.i.bf16 %v1051_v39, %v1013_v50  ;;  %v3468_v11 = vpack.i.bf16 %v1052_v62, %v1016_v51 }
 0x126   : > { %v4101_v55 = vmax.f32 %v809_v42, 0.0  ;;  %v810_v6 = vadd.f32 %v3783_v18, %v772_v13  ;;  %v900_v45 = vrot.slane %v3954_v7, 7  ;;  %v4781_v33 = vrot.slane %v4062_v4, 7 }
 0x127   : > { %v1020_v10 = vrot.slane %v4098_v44, 1  ;;  %v844_v43 = vmax.f32 %v812_v48, 0.0  ;;  %3459 = vrot.lane.b32.xlu1 %v3458_v12, %s3654_s27  ;;  %v1458_v56 = vsel %vm1456_vm3, %v3595_v1, 0  ;;  %v923_v12 = vrot.slane %v4098_v44, 7 }
 0x128   : > { %v4116_v62 = vsel %vm877_vm2, %v4781_v33, %v915_v40  ;;  %v920_v18 = vrot.slane %v4101_v55, 7  ;;  %v1017_v13 = vrot.slane %v4101_v55, 1  ;;  %v842_v2 = vmax.f32 %v810_v6, 0.0  ;;  %3474 = vrot.lane.b32.xlu0 %v3473_v14, %s3655_s28  ;;  %3321 = vmatpush3.bf16.msra.mxu1 %v1458_v56 }
 0x129   : > { %v924_v19 = vrot.slane %v844_v43, 7  ;;  %v3478_v47 = vpack.i.bf16 %v844_v43, %v4098_v44  ;;  %v1021_v51 = vrot.slane %v844_v43, 1  ;;  %3185 = vmatpush3.bf16.msra.mxu0 %v1458_v56  ;;  %v4782_v6 = vrot.slane %v4059_v9, 7  ;;  %3388 = vmatprep.subr.msk.bf16.mxu1 %vm1456_vm3, %v4107_v17 }
 0x12a   : > { %v921_v40 = vrot.slane %v842_v2, 7  ;;  %v3483_v42 = vpack.i.bf16 %v842_v2, %v4101_v55  ;;  %v1018_v50 = vrot.slane %v842_v2, 1  ;;  %v899_v1 = vrot.slane %v3939_v37, 7 }
 0x12b   : > { %v4129_v39 = vsel %vm877_vm2, %v4782_v6, %v918_v16  ;;  %3469 = vrot.lane.b32.xlu1 %v3468_v11, %s3655_s28  ;;  %v1022_v48 = vsel %vm974_vm1, %v1020_v10, %v1021_v51  ;;  %v1054_v14 = vsel %vm974_vm1, %v1021_v51, 0.0  ;;  %v4148_v11 = vsel %vm877_vm2, %v923_v12, %v924_v19 }
 0x12c   : > { %3484 = vrot.lane.b32.xlu0 %v3483_v42, %s3654_s27  ;;  %v1019_v43 = vsel %vm974_vm1, %v1017_v13, %v1018_v50  ;;  %v1053_v33 = vsel %vm974_vm1, %v1018_v50, 0.0  ;;  %v3493_v2 = vpack.i.bf16 %v1054_v14, %v1022_v48  ;;  %v4143_v16 = vsel %vm877_vm2, %v920_v18, %v921_v40 }
 0x12d   : > { %v3488_v56 = vpack.i.bf16 %v1053_v33, %v1019_v43  ;;  %v4153_v10 = vsel %vm877_vm2, %v899_v1, %v900_v45  ;;  %v4783_v13 = vpack.i.bf16 %v3803_v38, %v3794_v31  ;;  %v4784_v19 = vpack.i.bf16 %v3829_v58, %v3826_v57 }
 0x12e   : > { %v4785_v45 = vpack.i.bf16 %v3798_v34, %v3791_v29  ;;  %v4786_v38 = vpack.i.bf16 %v3857_v8, %v3838_v63  ;;  %v4787_v57 = vpack.i.bf16 %v3821_v54, %v3818_v53  ;;  %v4788_v34 = vpack.i.bf16 %v3883_v32, %v3880_v30 }
 0x12f   : > { %3479 = vrot.lane.b32.xlu1 %v3478_v47, %s3654_s27  ;;  %v3656_v47 = vmov 0   ;;  %v4789_v58 = vpack.i.bf16 %v3847_v3, %v3831_v59  ;;  %v4790_v8 = vpack.i.bf16 %v3911_v52, %v3892_v41  ;;  %v4791_v53 = vpack.i.bf16 %v3875_v26, %v3872_v25 }
 0x130   : > { %3489 = vrot.lane.b32.xlu0 %v3488_v56, %s3655_s28  ;;  %1363 = vst.msk [vmem:[#allocation2] sm:$0xff] %vm1346_vm4, %v3656_v47  ;;  %1365 = vst.msk [vmem:[#allocation2 + $0x88] sm:$0xff] %vm1346_vm4, %v3656_v47  ;;  %v4792_v54 = vpack.i.bf16 %v3937_v28, %v3934_v27  ;;  %v4793_v3 = vpack.i.bf16 %v3901_v46, %v3885_v35  ;;  %v4794_v30 = vpack.i.bf16 %v3963_v15, %v3946_v60 }
 0x131   : > { %v4795_v25 = vpack.i.bf16 %v3929_v22, %v3926_v21  ;;  %v4796_v26 = vpack.i.bf16 %v3989_v0, %v3986_v5  ;;  %v4797_v32 = vpack.i.bf16 %v3954_v7, %v3939_v37  ;;  %v4798_v46 = vpack.i.bf16 %v3981_v24, %v3978_v36 }
 0x132   : > { %v4799_v22 = vrot.slane %v3998_v49, 7  ;;  %v4800_v49 = vrot.slane %v3991_v23, 7 }
 0x133   : > { %3494 = vrot.lane.b32.xlu1 %v3493_v2, %s3655_s28 }
 0x134   : > { %3499 = vrot.lane.b32.xlu0 %v4783_v13, %s3654_s27  ;;  %v966_v5 = vsel %vm877_vm2, 0.0, %v4799_v22  ;;  %v967_v14 = vsel %vm877_vm2, 0.0, %v4800_v49 }
 0x137   : > { %3504 = vrot.lane.b32.xlu1 %v4784_v19, %s3655_s28 }
 0x138   : > { %3509 = vrot.lane.b32.xlu0 %v4785_v45, %s3654_s27 }
 0x13b   : > { %3514 = vrot.lane.b32.xlu1 %v4786_v38, %s3654_s27 }
 0x13c   : > { %3519 = vrot.lane.b32.xlu0 %v4787_v57, %s3655_s28  ;;  %v4801_v57 = vld [vmem:[#allocation11_spill] sm:$0xff] }
 0x13f   : > { %3524 = vrot.lane.b32.xlu1 %v4788_v34, %s3655_s28  ;;  %v4802_v34 = vrot.slane %v4801_v57, 7 }
 0x140   : > { %3529 = vrot.lane.b32.xlu0 %v4789_v58, %s3654_s27 }
 0x141   : > { %v968_v58 = vsel %vm877_vm2, 0.0, %v4802_v34  ;;  %v4808_v34 = vrot.slane %v4059_v9, 7 }
 0x143   : > { %3534 = vrot.lane.b32.xlu1 %v4790_v8, %s3654_s27 }
 0x144   : > { %3539 = vrot.lane.b32.xlu0 %v4791_v53, %s3655_s28 }
 0x147   : > { %3544 = vrot.lane.b32.xlu1 %v4792_v54, %s3655_s28 }
 0x148   : > { %3549 = vrot.lane.b32.xlu0 %v4793_v3, %s3654_s27 }
 0x14b   : > { %3554 = vrot.lane.b32.xlu1 %v4794_v30, %s3654_s27 }
 0x14c   : > { %3559 = vrot.lane.b32.xlu0 %v4795_v25, %s3655_s28  ;;  %v4803_v25 = vld [vmem:[#allocation12_spill] sm:$0xff] }
 0x14f   : > { %3564 = vrot.lane.b32.xlu1 %v4796_v26, %s3655_s28 }
 0x150   : > { %3569 = vrot.lane.b32.xlu0 %v4797_v32, %s3654_s27 }
 0x153   : > { %3574 = vrot.lane.b32.xlu1 %v4798_v46, %s3655_s28 }
 0x186   : > { %v3420_v52 = vpop.permute.xlu0 %3419 }
 0x187   : > { %v3422_v27 = vunpack.i.h.bf16 %v3420_v52  ;;  %v3421_v28 = vunpack.i.l.bf16 %v3420_v52 }
 0x189   : > { %v3430_v21 = vpop.permute.xlu1 %3429  ;;  %v1280_v7 = vsel %vm1263_vm5, %v966_v5, %v3421_v28  ;;  %v1281_v40 = vsel %vm1263_vm5, %v4032_v61, %v3422_v27  ;;  %v4804_v27 = vld [vmem:[#allocation10_spill] sm:$0xff] }
 0x18a   : > { %v3432_v15 = vunpack.i.h.bf16 %v3430_v21  ;;  %v3431_v0 = vunpack.i.l.bf16 %v3430_v21  ;;  %v3425_v51 = vpop.permute.xlu0 %3424  ;;  %v4805_v28 = vrot.slane %v4804_v27, 7  ;;  %v972_v27 = vsel %vm877_vm2, 0.0, %v920_v18 }
 0x18b   : > { %v3427_v36 = vunpack.i.h.bf16 %v3425_v51  ;;  %v3426_v24 = vunpack.i.l.bf16 %v3425_v51 }
 0x18c   : > { %v1313_v42 = vsel %vm1296_vm6, %v1280_v7, %v3431_v0  ;;  %v1314_v50 = vsel %vm1296_vm6, %v1281_v40, %v3432_v15  ;;  %v969_v21 = vsel %vm877_vm2, 0.0, %v4805_v28  ;;  %v4806_v40 = vld [vmem:[#allocation13_spill] sm:$0xff] }
 0x18d   : > { %v1337_v6 = vpack.c.bf16 %v1314_v50, %v1313_v42  ;;  %v3435_v48 = vpop.permute.xlu1 %3434  ;;  %v1283_v61 = vsel %vm1263_vm5, %v4039_v20, %v3427_v36  ;;  %v1282_v56 = vsel %vm1263_vm5, %v967_v14, %v3426_v24  ;;  %v1675_v14 = vsel %vm1456_vm3, %v4107_v17, 0 }
 0x18e   : > { %v3437_v43 = vunpack.i.h.bf16 %v3435_v48  ;;  %v3436_v33 = vunpack.i.l.bf16 %v3435_v48  ;;  %v3445_v2 = vpop.permute.xlu0 %3444 }
 0x18f   : > { %1355 = vst.msk [vmem:[#allocation2 + $0x48] sm:$0xff] %vm1346_vm4, %v1337_v6  ;;  %v3447_v45 = vunpack.i.h.bf16 %v3445_v2  ;;  %v3446_v47 = vunpack.i.l.bf16 %v3445_v2 }
 0x190   : > { %v1316_v13 = vsel %vm1296_vm6, %v1283_v61, %v3437_v43  ;;  %v1315_v19 = vsel %vm1296_vm6, %v1282_v56, %v3436_v33  ;;  %v4268_v43 = vld [vmem:[%s4750_s4 + $0x10] sm:$0x3f]   ;;  %v4807_v33 = vrot.slane %v4062_v4, 7 }
 0x191   : > { %v1338_v38 = vpack.c.bf16 %v1316_v13, %v1315_v19  ;;  %v3440_v23 = vpop.permute.xlu1 %3439  ;;  %v1284_v30 = vsel %vm1263_vm5, %v968_v58, %v3446_v47  ;;  %v1285_v26 = vsel %vm1263_vm5, %v4803_v25, %v3447_v45  ;;  %v971_v58 = vsel %vm877_vm2, 0.0, %v4808_v34 }
 0x192   : > { %v3455_v8 = vpop.permute.xlu0 %3454  ;;  %v3442_v53 = vunpack.i.h.bf16 %v3440_v23  ;;  %v3441_v54 = vunpack.i.l.bf16 %v3440_v23  ;;  %v970_v2 = vsel %vm877_vm2, 0.0, %v4807_v33 }
 0x193   : > { %1356 = vst.msk [vmem:[#allocation2 + $0x50] sm:$0xff] %vm1346_vm4, %v1338_v38  ;;  %v3457_v20 = vunpack.i.h.bf16 %v3455_v8  ;;  %v3456_v3 = vunpack.i.l.bf16 %v3455_v8 }
 0x194   : > { %v1286_v7 = vsel %vm1263_vm5, %v969_v21, %v3441_v54  ;;  %v1287_v36 = vsel %vm1263_vm5, %v4806_v40, %v3442_v53 }
 0x195   : > { %v1317_v32 = vsel %vm1296_vm6, %v1284_v30, %v3456_v3  ;;  %v1318_v46 = vsel %vm1296_vm6, %v1285_v26, %v3457_v20  ;;  %v3450_v52 = vpop.permute.xlu1 %3449 }
 0x196   : > { %v1339_v22 = vpack.c.bf16 %v1318_v46, %v1317_v32  ;;  %v3452_v5 = vunpack.i.h.bf16 %v3450_v52  ;;  %v3451_v15 = vunpack.i.l.bf16 %v3450_v52  ;;  %v3465_v0 = vpop.permute.xlu0 %3464  ;;  %v4253_v51 = vld [vmem:[#allocation2 + $0x48] sm:$0xff] }
 0x197   : > { %3202 = vmatprep.mubr.msk.bf16.mxu1 %vm1346_vm4, %v4253_v51  ;;  %v3467_v50 = vunpack.i.h.bf16 %v3465_v0  ;;  %v3466_v6 = vunpack.i.l.bf16 %v3465_v0 }
 0x198   : > { %1357 = vst.msk [vmem:[#allocation2 + $0x58] sm:$0xff] %vm1346_vm4, %v1339_v22  ;;  %v1319_v24 = vsel %vm1296_vm6, %v1286_v7, %v3451_v15  ;;  %v1320_v42 = vsel %vm1296_vm6, %v1287_v36, %v3452_v5  ;;  %v973_v36 = vsel %vm877_vm2, 0.0, %v923_v12 }
 0x199   : > { %v1340_v48 = vpack.c.bf16 %v1320_v42, %v1319_v24  ;;  %v3460_v49 = vpop.permute.xlu1 %3459  ;;  %v1288_v17 = vsel %vm1263_vm5, %v970_v2, %v3466_v6  ;;  %v1289_v38 = vsel %vm1263_vm5, %v4116_v62, %v3467_v50 }
 0x19a   : > { %v3475_v61 = vpop.permute.xlu0 %3474  ;;  %v4273_v56 = vld [vmem:[#allocation2 + $0x50] sm:$0xff]  ;;  %v3462_v13 = vunpack.i.h.bf16 %v3460_v49  ;;  %v3461_v19 = vunpack.i.l.bf16 %v3460_v49 }
 0x19b   : > { %1358 = vst.msk [vmem:[#allocation2 + $0x60] sm:$0xff] %vm1346_vm4, %v1340_v48  ;;  %v3477_v45 = vunpack.i.h.bf16 %v3475_v61  ;;  %v3476_v47 = vunpack.i.l.bf16 %v3475_v61  ;;  %3203 = vmatmul.mubr.msk.bf16.vlgmr.msra.gmra.mrb[0].mxu1 %vm1346_vm4, %v4273_v56 }
 0x19c   : > { %3219 = vmatpush3.bf16.msra.mxu1 %v1675_v14  ;;  %v1290_v3 = vsel %vm1263_vm5, %v971_v58, %v3461_v19  ;;  %v1291_v62 = vsel %vm1263_vm5, %v4129_v39, %v3462_v13  ;;  %v4809_v13 = vrot.slane %v3794_v31, 7 }
 0x19d   : > { %v1321_v4 = vsel %vm1296_vm6, %v1288_v17, %v3476_v47  ;;  %v1322_v23 = vsel %vm1296_vm6, %v1289_v38, %v3477_v45  ;;  %v3470_v57 = vpop.permute.xlu1 %3469  ;;  %3389 = vmatprep.subr.msk.bf16.mxu1 %vm1456_vm3, %v4268_v43  ;;  %v4810_v38 = vld [vmem:[#allocation3_spill] sm:$0xff] }
 0x19e   : > { %v1341_v8 = vpack.c.bf16 %v1322_v23, %v1321_v4  ;;  %v3472_v53 = vunpack.i.h.bf16 %v3470_v57  ;;  %v3471_v54 = vunpack.i.l.bf16 %v3470_v57  ;;  %v3485_v20 = vpop.permute.xlu0 %3484  ;;  %v958_v19 = vsel %vm877_vm2, 0.0, %v4809_v13 }
 0x19f   : > { %v4291_v30 = vld [vmem:[#allocation2 + $0x58] sm:$0xff]  ;;  %v3487_v9 = vunpack.i.h.bf16 %v3485_v20  ;;  %v3486_v32 = vunpack.i.l.bf16 %v3485_v20 }
 0x1a0   : > { %1359 = vst.msk [vmem:[#allocation2 + $0x68] sm:$0xff] %vm1346_vm4, %v1341_v8  ;;  %v1323_v25 = vsel %vm1296_vm6, %v1290_v3, %v3471_v54  ;;  %v1324_v26 = vsel %vm1296_vm6, %v1291_v62, %v3472_v53  ;;  %3206 = vmatprep.mubr.msk.bf16.mxu1 %vm1346_vm4, %v4291_v30  ;;  %v4811_v54 = vrot.slane %v3791_v29, 7 }
 0x1a1   : > { %v1342_v46 = vpack.c.bf16 %v1324_v26, %v1323_v25  ;;  %v3480_v52 = vpop.permute.xlu1 %3479  ;;  %v1292_v0 = vsel %vm1263_vm5, %v972_v27, %v3486_v32  ;;  %v1293_v7 = vsel %vm1263_vm5, %v4143_v16, %v3487_v9 }
 0x1a2   : > { %v3490_v39 = vpop.permute.xlu0 %3489  ;;  %v4301_v28 = vld [vmem:[#allocation2 + $0x60] sm:$0xff]  ;;  %v3482_v21 = vunpack.i.h.bf16 %v3480_v52  ;;  %v3481_v22 = vunpack.i.l.bf16 %v3480_v52  ;;  %v959_v20 = vsel %vm877_vm2, 0.0, %v4811_v54 }
 0x1a3   : > { %1360 = vst.msk [vmem:[#allocation2 + $0x70] sm:$0xff] %vm1346_vm4, %v1342_v46  ;;  %v3492_v5 = vunpack.i.h.bf16 %v3490_v39  ;;  %v3491_v15 = vunpack.i.l.bf16 %v3490_v39  ;;  %3207 = vmatmul.mubr.msk.bf16.gmra.mrb[4].mxu1 %vm1346_vm4, %v4301_v28  ;;  %v4812_v46 = vld [vmem:[#allocation4_spill] sm:$0xff] }
 0x1a4   : > { %v1294_v48 = vsel %vm1263_vm5, %v973_v36, %v3481_v22  ;;  %v1295_v49 = vsel %vm1263_vm5, %v4148_v11, %v3482_v21  ;;  %v1366_v22 = vld [vmem:[#allocation2] sm:$0xff] }
 0x1a5   : > { %v1325_v55 = vsel %vm1296_vm6, %v1292_v0, %v3491_v15  ;;  %v1326_v18 = vsel %vm1296_vm6, %v1293_v7, %v3492_v5  ;;  %v3495_v40 = vpop.permute.xlu1 %3494  ;;  %v4813_v5 = vrot.slane %v3838_v63, 7  ;;  %v4814_v36 = vld [vmem:[#allocation5_spill] sm:$0xff] }
 0x1a6   : > { %v1343_v24 = vpack.c.bf16 %v1326_v18, %v1325_v55  ;;  %v3497_v42 = vunpack.i.h.bf16 %v3495_v40  ;;  %v3496_v50 = vunpack.i.l.bf16 %v3495_v40  ;;  %v3500_v6 = vpop.permute.xlu0 %3499 }
 0x1a7   : > { %v3502_v14 = vunpack.i.h.bf16 %v3500_v6  ;;  %v3501_v16 = vunpack.i.l.bf16 %v3500_v6  ;;  %v4317_v33 = vld [vmem:[#allocation2 + $0x68] sm:$0xff]  ;;  %v960_v15 = vsel %vm877_vm2, 0.0, %v4813_v5 }
 0x1a8   : > { %1361 = vst.msk [vmem:[#allocation2 + $0x78] sm:$0xff] %vm1346_vm4, %v1343_v24  ;;  %v1327_v2 = vsel %vm1296_vm6, %v1294_v48, %v3496_v50  ;;  %v1328_v44 = vsel %vm1296_vm6, %v1295_v49, %v3497_v42  ;;  %3210 = vmatprep.mubr.msk.bf16.mxu1 %vm1346_vm4, %v4317_v33 }
 0x1a9   : > { %v1344_v12 = vpack.c.bf16 %v1328_v44, %v1327_v2  ;;  %v3505_v61 = vpop.permute.xlu1 %3504  ;;  %v1265_v4 = vsel %vm1263_vm5, %v4810_v38, %v3502_v14  ;;  %v1264_v23 = vsel %vm1263_vm5, %v958_v19, %v3501_v16  ;;  %v4815_v16 = vrot.slane %v3831_v59, 7 }
 0x1aa   : > { %v3507_v11 = vunpack.i.h.bf16 %v3505_v61  ;;  %v3506_v45 = vunpack.i.l.bf16 %v3505_v61  ;;  %v3510_v47 = vpop.permute.xlu0 %3509  ;;  %v4327_v17 = vld [vmem:[#allocation2 + $0x70] sm:$0xff] }
 0x1ab   : > { %1362 = vst.msk [vmem:[#allocation2 + $0x80] sm:$0xff] %vm1346_vm4, %v1344_v12  ;;  %3211 = vmatmul.mubr.msk.bf16.gmra.mrb[8].mxu1 %vm1346_vm4, %v4327_v17  ;;  %v3512_v34 = vunpack.i.h.bf16 %v3510_v47  ;;  %v3511_v58 = vunpack.i.l.bf16 %v3510_v47  ;;  %v961_v2 = vsel %vm877_vm2, 0.0, %v4815_v16 }
 0x1ac   : > { %v1297_v57 = vsel %vm1296_vm6, %v1264_v23, %v3506_v45  ;;  %v1298_v31 = vsel %vm1296_vm6, %v1265_v4, %v3507_v11  ;;  %v4816_v45 = vld [vmem:[#allocation6_spill] sm:$0xff] }
 0x1ad   : > { %v1329_v8 = vpack.c.bf16 %v1298_v31, %v1297_v57  ;;  %v3515_v53 = vpop.permute.xlu1 %3514  ;;  %v1267_v52 = vsel %vm1263_vm5, %v4812_v46, %v3512_v34  ;;  %v1266_v27 = vsel %vm1263_vm5, %v959_v20, %v3511_v58  ;;  %v1912_v57 = vsel %vm1456_vm3, %v4268_v43, 0  ;;  %v4818_v20 = vld [vmem:[#allocation7_spill] sm:$0xff] }
 0x1ae   : > { %v3520_v3 = vpop.permute.xlu0 %3519  ;;  %v3517_v62 = vunpack.i.h.bf16 %v3515_v53  ;;  %v3516_v25 = vunpack.i.l.bf16 %v3515_v53  ;;  %v4817_v31 = vrot.slane %v3892_v41, 7 }
 0x1af   : > { %1347 = vst.msk [vmem:[#allocation2 + $0x8] sm:$0xff] %vm1346_vm4, %v1329_v8  ;;  %v3522_v26 = vunpack.i.h.bf16 %v3520_v3  ;;  %v3521_v9 = vunpack.i.l.bf16 %v3520_v3  ;;  %v4341_v32 = vld [vmem:[#allocation2 + $0x78] sm:$0xff] }
 0x1b0   : > { %3214 = vmatprep.mubr.msk.bf16.mxu1 %vm1346_vm4, %v4341_v32  ;;  %v1269_v24 = vsel %vm1263_vm5, %v4814_v36, %v3517_v62  ;;  %v1268_v42 = vsel %vm1263_vm5, %v960_v15, %v3516_v25  ;;  %v962_v34 = vsel %vm877_vm2, 0.0, %v4817_v31 }
 0x1b1   : > { %v1299_v29 = vsel %vm1296_vm6, %v1266_v27, %v3521_v9  ;;  %v1300_v39 = vsel %vm1296_vm6, %v1267_v52, %v3522_v26  ;;  %v3525_v21 = vpop.permute.xlu1 %3524  ;;  %v4819_v27 = vrot.slane %v3885_v35, 7 }
 0x1b2   : > { %v1330_v0 = vpack.c.bf16 %v1300_v39, %v1299_v29  ;;  %v3527_v7 = vunpack.i.h.bf16 %v3525_v21  ;;  %v3526_v55 = vunpack.i.l.bf16 %v3525_v21  ;;  %v3530_v18 = vpop.permute.xlu0 %3529  ;;  %v4353_v40 = vld [vmem:[#allocation2 + $0x80] sm:$0xff] }
 0x1b3   : > { %3215 = vmatmul.mubr.msk.bf16.gmra.mrb[12].mxu1 %vm1346_vm4, %v4353_v40  ;;  %v3532_v6 = vunpack.i.h.bf16 %v3530_v18  ;;  %v3531_v48 = vunpack.i.l.bf16 %v3530_v18  ;;  %v963_v29 = vsel %vm877_vm2, 0.0, %v4819_v27 }
 0x1b4   : > { %1348 = vst.msk [vmem:[#allocation2 + $0x10] sm:$0xff] %vm1346_vm4, %v1330_v0  ;;  %v1301_v63 = vsel %vm1296_vm6, %v1268_v42, %v3526_v55  ;;  %v1302_v50 = vsel %vm1296_vm6, %v1269_v24, %v3527_v7  ;;  %3220 = vmatprep.mubr.msk.bf16.mxu1 %vm1346_vm4, %v1366_v22  ;;  %v4820_v7 = vld [vmem:[#allocation8_spill] sm:$0xff]  ;;  %v4821_v42 = vrot.slane %v3946_v60, 7 }
 0x1b5   : > { %v1331_v49 = vpack.c.bf16 %v1302_v50, %v1301_v63  ;;  %v3535_v14 = vpop.permute.xlu1 %3534  ;;  %v1271_v47 = vsel %vm1263_vm5, %v4816_v45, %v3532_v6  ;;  %v1270_v38 = vsel %vm1263_vm5, %v961_v2, %v3531_v48  ;;  %v965_v45 = vsel %vm877_vm2, 0.0, %v899_v1 }
 0x1b6   : > { %v3540_v44 = vpop.permute.xlu0 %3539  ;;  %v1384_v12 = vld [vmem:[#allocation2 + $0x8] sm:$0xff]  ;;  %v3537_v61 = vunpack.i.h.bf16 %v3535_v14  ;;  %v3536_v13 = vunpack.i.l.bf16 %v3535_v14  ;;  %v964_v63 = vsel %vm877_vm2, 0.0, %v4821_v42  ;;  %v4822_v14 = vld [vmem:[#allocation9_spill] sm:$0xff] }
 0x1b7   : > { %1349 = vst.msk [vmem:[#allocation2 + $0x18] sm:$0xff] %vm1346_vm4, %v1331_v49  ;;  %v3542_v19 = vunpack.i.h.bf16 %v3540_v44  ;;  %v3541_v11 = vunpack.i.l.bf16 %v3540_v44  ;;  %3186 = vmatprep.mubr.msk.bf16.mxu0 %vm1346_vm4, %v1384_v12 }
 0x1b8   : > { %v1273_v3 = vsel %vm1263_vm5, %v4818_v20, %v3537_v61  ;;  %v1272_v62 = vsel %vm1263_vm5, %v962_v34, %v3536_v13 }
 0x1b9   : > { %v1303_v4 = vsel %vm1296_vm6, %v1270_v38, %v3541_v11  ;;  %v1304_v59 = vsel %vm1296_vm6, %v1271_v47, %v3542_v19  ;;  %v3545_v23 = vpop.permute.xlu1 %3544 }
 0x1ba   : > { %v1332_v58 = vpack.c.bf16 %v1304_v59, %v1303_v4  ;;  %v3547_v8 = vunpack.i.h.bf16 %v3545_v23  ;;  %v3546_v53 = vunpack.i.l.bf16 %v3545_v23  ;;  %v3550_v54 = vpop.permute.xlu0 %3549 }
 0x1bb   : > { %3221 = vmatmul.mubr.msk.bf16.vlgmr.msra.gmra.mrb[16].mxu1 %vm1346_vm4, %v1384_v12  ;;  %v4383_v25 = vld [vmem:[#allocation2 + $0x10] sm:$0xff]  ;;  %v3552_v26 = vunpack.i.h.bf16 %v3550_v54  ;;  %v3551_v9 = vunpack.i.l.bf16 %v3550_v54 }
 0x1bc   : > { %1350 = vst.msk [vmem:[#allocation2 + $0x20] sm:$0xff] %vm1346_vm4, %v1332_v58  ;;  %v1305_v43 = vsel %vm1296_vm6, %v1272_v62, %v3546_v53  ;;  %v1306_v41 = vsel %vm1296_vm6, %v1273_v3, %v3547_v8  ;;  %3253 = vmatpush3.bf16.msra.mxu1 %v1912_v57  ;;  %3187 = vmatmul.mubr.msk.bf16.vlgmr.msra.gmra.mrb[32].mxu0 %vm1346_vm4, %v4383_v25  ;;  %v2233_v58 = vld [vmem:[%s4753_s7] sm:$0x3] }
 0x1bd   : > { %v1333_v46 = vpack.c.bf16 %v1306_v41, %v1305_v43  ;;  %3224 = vmatprep.mubr.msk.bf16.mxu1 %vm1346_vm4, %v4383_v25  ;;  %v3555_v52 = vpop.permute.xlu1 %3554  ;;  %v1275_v55 = vsel %vm1263_vm5, %v4820_v7, %v3552_v26  ;;  %v1274_v18 = vsel %vm1263_vm5, %v963_v29, %v3551_v9  ;;  %3390 = vmatprep.subr.msk.bf16.mxu0 %vm2282_vm7, %v2233_v58  ;;  %v4490_v29 = vld [vmem:[%s4752_s6] ss:$0 sm:$0xff] }
 0x1be   : > { %v3560_v39 = vpop.permute.xlu0 %3559  ;;  %v1386_v21 = vld [vmem:[#allocation2 + $0x18] sm:$0xff]  ;;  %v3557_v22 = vunpack.i.h.bf16 %v3555_v52  ;;  %v3556_v5 = vunpack.i.l.bf16 %v3555_v52 }
 0x1bf   : > { %1351 = vst.msk [vmem:[#allocation2 + $0x28] sm:$0xff] %vm1346_vm4, %v1333_v46  ;;  %v3562_v15 = vunpack.i.h.bf16 %v3560_v39  ;;  %v3561_v0 = vunpack.i.l.bf16 %v3560_v39  ;;  %3190 = vmatprep.mubr.msk.bf16.mxu0 %vm1346_vm4, %v1386_v21  ;;  %v4485_v46 = vld [vmem:[%s4751_s5] ss:$0 sm:$0xff] }
 0x1c0   : > { %v1277_v16 = vsel %vm1263_vm5, %v4822_v14, %v3557_v22  ;;  %v1276_v2 = vsel %vm1263_vm5, %v964_v63, %v3556_v5 }
 0x1c1   : > { %v1307_v36 = vsel %vm1296_vm6, %v1274_v18, %v3561_v0  ;;  %v1308_v35 = vsel %vm1296_vm6, %v1275_v55, %v3562_v15  ;;  %v3565_v24 = vpop.permute.xlu1 %3564 }
 0x1c2   : > { %v1334_v50 = vpack.c.bf16 %v1308_v35, %v1307_v36  ;;  %v3567_v6 = vunpack.i.h.bf16 %v3565_v24  ;;  %v3566_v48 = vunpack.i.l.bf16 %v3565_v24  ;;  %v3570_v49 = vpop.permute.xlu0 %3569 }
 0x1c3   : > { %v3572_v44 = vunpack.i.h.bf16 %v3570_v49  ;;  %v3571_v12 = vunpack.i.l.bf16 %v3570_v49  ;;  %3225 = vmatmul.mubr.msk.bf16.gmra.mrb[20].mxu1 %vm1346_vm4, %v1386_v21  ;;  %v1387_v61 = vld [vmem:[#allocation2 + $0x20] sm:$0xff] }
 0x1c4   : > { %1352 = vst.msk [vmem:[#allocation2 + $0x30] sm:$0xff] %vm1346_vm4, %v1334_v50  ;;  %v1309_v60 = vsel %vm1296_vm6, %v1276_v2, %v3566_v48  ;;  %v1310_v13 = vsel %vm1296_vm6, %v1277_v16, %v3567_v6  ;;  %3191 = vmatmul.mubr.msk.bf16.gmra.mrb[36].mxu0 %vm1346_vm4, %v1387_v61  ;;  %3228 = vmatprep.mubr.msk.bf16.mxu1 %vm1346_vm4, %v1387_v61 }
 0x1c5   : > { %v1335_v19 = vpack.c.bf16 %v1310_v13, %v1309_v60  ;;  %v3575_v11 = vpop.permute.xlu1 %3574  ;;  %v1279_v59 = vsel %vm1263_vm5, %v4153_v10, %v3572_v44  ;;  %v1278_v23 = vsel %vm1263_vm5, %v965_v45, %v3571_v12 }
 0x1c6   : > { %v3577_v47 = vunpack.i.h.bf16 %v3575_v11  ;;  %v3576_v38 = vunpack.i.l.bf16 %v3575_v11  ;;  %v1388_v4 = vld [vmem:[#allocation2 + $0x28] sm:$0xff] }
 0x1c7   : > { %1353 = vst.msk [vmem:[#allocation2 + $0x38] sm:$0xff] %vm1346_vm4, %v1335_v19  ;;  %3194 = vmatprep.mubr.msk.bf16.mxu0 %vm1346_vm4, %v1388_v4 }
 0x1c8   : > { %v1311_v57 = vsel %vm1296_vm6, %v1278_v23, %v3576_v38  ;;  %v1312_v31 = vsel %vm1296_vm6, %v1279_v59, %v3577_v47 }
 0x1c9   : > { %v1336_v34 = vpack.c.bf16 %v1312_v31, %v1311_v57 }
 0x1cb   : > { %1354 = vst.msk [vmem:[#allocation2 + $0x40] sm:$0xff] %vm1346_vm4, %v1336_v34  ;;  %3229 = vmatmul.mubr.msk.bf16.gmra.mrb[24].mxu1 %vm1346_vm4, %v1388_v4  ;;  %v1389_v37 = vld [vmem:[#allocation2 + $0x30] sm:$0xff] }
 0x1cc   : > { %3195 = vmatmul.mubr.msk.bf16.gmra.mrb[40].mxu0 %vm1346_vm4, %v1389_v37  ;;  %3232 = vmatprep.mubr.msk.bf16.mxu1 %vm1346_vm4, %v1389_v37 }
 0x1ce   : > { %v1390_v1 = vld [vmem:[#allocation2 + $0x38] sm:$0xff] }
 0x1cf   : > { %3198 = vmatprep.mubr.msk.bf16.mxu0 %vm1346_vm4, %v1390_v1 }
 0x1d2   : > { %v1391_v10 = vld [vmem:[#allocation2 + $0x40] sm:$0xff] }
 0x1d3   : > { %3233 = vmatmul.mubr.msk.bf16.gmra.mrb[28].mxu1 %vm1346_vm4, %v1390_v1 }
 0x1d4   : > { %3199 = vmatmul.mubr.msk.bf16.gmra.mrb[44].mxu0 %vm1346_vm4, %v1391_v10  ;;  %3236 = vmatprep.mubr.msk.bf16.mxu1 %vm1346_vm4, %v1391_v10 }
 0x1db   : > { %3237 = vmatmul.mubr.msk.bf16.gmra.mrb[0].mxu1 %vm1346_vm4, %v4253_v51 }
 0x1dc   : > { %3240 = vmatprep.mubr.msk.bf16.mxu1 %vm1346_vm4, %v4273_v56 }
 0x1e3   : > { %3241 = vmatmul.mubr.msk.bf16.gmra.mrb[4].mxu1 %vm1346_vm4, %v4291_v30 }
 0x1e4   : > { %3244 = vmatprep.mubr.msk.bf16.mxu1 %vm1346_vm4, %v4301_v28 }
 0x1eb   : > { %3245 = vmatmul.mubr.msk.bf16.gmra.mrb[8].mxu1 %vm1346_vm4, %v4317_v33 }
 0x1ec   : > { %3248 = vmatprep.mubr.msk.bf16.mxu1 %vm1346_vm4, %v4327_v17 }
 0x1f3   : > { %3249 = vmatmul.mubr.msk.bf16.gmra.mrb[12].mxu1 %vm1346_vm4, %v4341_v32 }
 0x1f4   : > { %3254 = vmatprep.mubr.msk.bf16.mxu1 %vm1346_vm4, %v4383_v25 }
 0x1fb   : > { %3255 = vmatmul.mubr.msk.bf16.vlgmr.msra.gmra.mrb[16].mxu1 %vm1346_vm4, %v1386_v21 }
 0x1fc   : > { %3258 = vmatprep.mubr.msk.bf16.mxu1 %vm1346_vm4, %v1387_v61 }
 0x203   : > { %3259 = vmatmul.mubr.msk.bf16.gmra.mrb[20].mxu1 %vm1346_vm4, %v1388_v4 }
 0x204   : > { %3262 = vmatprep.mubr.msk.bf16.mxu1 %vm1346_vm4, %v1389_v37 }
 0x20b   : > { %3263 = vmatmul.mubr.msk.bf16.gmra.mrb[24].mxu1 %vm1346_vm4, %v1390_v1 }
 0x20c   : > { %3266 = vmatprep.mubr.msk.bf16.mxu1 %vm1346_vm4, %v1391_v10 }
 0x213   : > { %3267 = vmatmul.mubr.msk.bf16.gmra.mrb[28].mxu1 %vm1346_vm4, %v4253_v51  ;;  %v2284_v51 = vsel %vm2282_vm7, %v2233_v58, 0 }
 0x214   : > { %3270 = vmatprep.mubr.msk.bf16.mxu1 %vm1346_vm4, %v4273_v56  ;;  %3287 = vmatpush3.bf16.msra.mxu0 %v2284_v51  ;;  %v1854_v56 = vld [vmem:[#allocation2 + $0x88] sm:$0xff] }
 0x21b   : > { %3271 = vmatmul.mubr.msk.bf16.gmra.mrb[0].mxu1 %vm1346_vm4, %v4291_v30 }
 0x21c   : > { %3274 = vmatprep.mubr.msk.bf16.mxu1 %vm1346_vm4, %v4301_v28 }
 0x223   : > { %3275 = vmatmul.mubr.msk.bf16.gmra.mrb[4].mxu1 %vm1346_vm4, %v4317_v33 }
 0x224   : > { %3278 = vmatprep.mubr.msk.bf16.mxu1 %vm1346_vm4, %v4327_v17 }
 0x22b   : > { %3279 = vmatmul.mubr.msk.bf16.gmra.mrb[8].mxu1 %vm1346_vm4, %v4341_v32 }
 0x22c   : > { %3282 = vmatprep.mubr.msk.bf16.mxu1 %vm1346_vm4, %v4353_v40 }
 0x233   : > { %3283 = vmatmul.mubr.msk.bf16.gmra.mrb[12].mxu1 %vm1346_vm4, %v1854_v56 }
 0x28f   : > { %v3188_v30 = vpop.f32.mrb[32].mxu0 }
 0x290   : > { %v1494_v28 = vpop.f32.mrb[33].mxu0 }
 0x291   : > { %v3189_v33 = vpop.f32.mrb[34].mxu0 }
 0x292   : > { %v1497_v17 = vpop.f32.mrb[35].mxu0 }
 0x297   : > { %v3192_v8 = vpop.f32.mrb[36].mxu0 }
 0x298   : > { %v1510_v53 = vpop.f32.mrb[37].mxu0 }
 0x299   : > { %v3193_v54 = vpop.f32.mrb[38].mxu0 }
 0x29a   : > { %v1513_v20 = vpop.f32.mrb[39].mxu0 }
 0x29f   : > { %v3196_v3 = vpop.f32.mrb[40].mxu0 }
 0x2a0   : > { %v1526_v62 = vpop.f32.mrb[41].mxu0 }
 0x2a1   : > { %v3197_v32 = vpop.f32.mrb[42].mxu0 }
 0x2a2   : > { %v1529_v25 = vpop.f32.mrb[43].mxu0 }
 0x2a7   : > { %v4474_v43 = vpop.f32.mrb[44].mxu0 }
 0x2a8   : > { %v4476_v41 = vpop.f32.mrb[45].mxu0 }
 0x2a9   : > { %v4478_v40 = vpop.f32.mrb[46].mxu0 }
 0x2aa   : > { %v4480_v26 = vpop.f32.mrb[47].mxu0 }
 0x2ce   : > { %v3256_v9 = vpop.f32.mrb[16].mxu1 }
 0x2cf   : > { %v3322_v52 = vadd.f32 %v3256_v9, %v3188_v30  ;;  %v1948_v27 = vpop.f32.mrb[17].mxu1 }
 0x2d0   : > { %v3323_v39 = vadd.f32 %v1948_v27, %v1494_v28  ;;  %v3257_v21 = vpop.f32.mrb[18].mxu1 }
 0x2d1   : > { %v2116_v22 = vmul.f32 %v3322_v52, %v4485_v46  ;;  %v3324_v5 = vadd.f32 %v3257_v21, %v3189_v33  ;;  %v1951_v15 = vpop.f32.mrb[19].mxu1 }
 0x2d2   : > { %v2114_v0 = vmul.f32 %v3323_v39, %v4485_v46  ;;  %v3325_v7 = vadd.f32 %v1951_v15, %v1497_v17 }
 0x2d3   : > { %v2155_v55 = vadd.f32 %v4490_v29, %v2116_v22  ;;  %v2117_v18 = vmul.f32 %v3324_v5, %v4485_v46 }
 0x2d4   : > { %v2153_v36 = vadd.f32 %v4490_v29, %v2114_v0  ;;  %v2115_v35 = vmul.f32 %v3325_v7, %v4485_v46 }
 0x2d5   : > { %v2156_v24 = vadd.f32 %v4490_v29, %v2117_v18  ;;  %v2187_v50 = vmax.f32 %v2155_v55, 0.0 }
 0x2d6   : > { %v2154_v42 = vadd.f32 %v4490_v29, %v2115_v35  ;;  %v3260_v63 = vpop.f32.mrb[20].mxu1  ;;  %v2185_v14 = vmax.f32 %v2153_v36, 0.0 }
 0x2d7   : > { %v2188_v6 = vmax.f32 %v2156_v24, 0.0  ;;  %v3326_v48 = vadd.f32 %v3260_v63, %v3192_v8  ;;  %v1964_v49 = vpop.f32.mrb[21].mxu1 }
 0x2d8   : > { %v2186_v16 = vmax.f32 %v2154_v42, 0.0  ;;  %v3327_v2 = vadd.f32 %v1964_v49, %v1510_v53  ;;  %v3261_v44 = vpop.f32.mrb[22].mxu1 }
 0x2d9   : > { %v2218_v12 = vpack.c.bf16 %v2188_v6, %v2187_v50  ;;  %v2120_v61 = vmul.f32 %v3326_v48, %v4485_v46  ;;  %v3328_v60 = vadd.f32 %v3261_v44, %v3193_v54  ;;  %v1967_v13 = vpop.f32.mrb[23].mxu1 }
 0x2da   : > { %v2217_v19 = vpack.c.bf16 %v2186_v16, %v2185_v14  ;;  %v2118_v11 = vmul.f32 %v3327_v2, %v4485_v46  ;;  %v3329_v45 = vadd.f32 %v1967_v13, %v1513_v20 }
 0x2db   : > { %v2159_v47 = vadd.f32 %v4490_v29, %v2120_v61  ;;  %v2121_v38 = vmul.f32 %v3328_v60, %v4485_v46 }
 0x2dc   : > { %v2157_v4 = vadd.f32 %v4490_v29, %v2118_v11  ;;  %v2119_v59 = vmul.f32 %v3329_v45, %v4485_v46  ;;  %3288 = vmatprep.mubr.msk.bf16.mxu0 %vm1263_vm5, %v2217_v19 }
 0x2dd   : > { %v2160_v23 = vadd.f32 %v4490_v29, %v2121_v38  ;;  %3289 = vmatmul.mubr.msk.bf16.vlgmr.msra.gmra.mrb[48].mxu0 %vm1263_vm5, %v2218_v12  ;;  %v2191_v34 = vmax.f32 %v2159_v47, 0.0 }
 0x2de   : > { %v2158_v57 = vadd.f32 %v4490_v29, %v2119_v59  ;;  %v3264_v31 = vpop.f32.mrb[24].mxu1  ;;  %v2189_v58 = vmax.f32 %v2157_v4, 0.0 }
 0x2df   : > { %v2192_v37 = vmax.f32 %v2160_v23, 0.0  ;;  %v3330_v1 = vadd.f32 %v3264_v31, %v3196_v3  ;;  %v1980_v10 = vpop.f32.mrb[25].mxu1 }
 0x2e0   : > { %v2190_v51 = vmax.f32 %v2158_v57, 0.0  ;;  %v3331_v56 = vadd.f32 %v1980_v10, %v1526_v62  ;;  %v3265_v30 = vpop.f32.mrb[26].mxu1 }
 0x2e1   : > { %v2220_v28 = vpack.c.bf16 %v2192_v37, %v2191_v34  ;;  %v2124_v33 = vmul.f32 %v3330_v1, %v4485_v46  ;;  %v3332_v17 = vadd.f32 %v3265_v30, %v3197_v32  ;;  %v1983_v8 = vpop.f32.mrb[27].mxu1 }
 0x2e2   : > { %v2219_v53 = vpack.c.bf16 %v2190_v51, %v2189_v58  ;;  %v2122_v54 = vmul.f32 %v3331_v56, %v4485_v46  ;;  %v3333_v20 = vadd.f32 %v1983_v8, %v1529_v25 }
 0x2e3   : > { %v2163_v9 = vadd.f32 %v4490_v29, %v2124_v33  ;;  %v2125_v52 = vmul.f32 %v3332_v17, %v4485_v46 }
 0x2e4   : > { %v2161_v3 = vadd.f32 %v4490_v29, %v2122_v54  ;;  %v2123_v27 = vmul.f32 %v3333_v20, %v4485_v46  ;;  %3292 = vmatprep.mubr.msk.bf16.mxu0 %vm1263_vm5, %v2219_v53 }
 0x2e5   : > { %v2164_v62 = vadd.f32 %v4490_v29, %v2125_v52  ;;  %3293 = vmatmul.mubr.msk.bf16.gmra.mrb[52].mxu0 %vm1263_vm5, %v2220_v28  ;;  %v2195_v21 = vmax.f32 %v2163_v9, 0.0 }
 0x2e6   : > { %v2162_v32 = vadd.f32 %v4490_v29, %v2123_v27  ;;  %v3268_v39 = vpop.f32.mrb[28].mxu1  ;;  %v2193_v15 = vmax.f32 %v2161_v3, 0.0 }
 0x2e7   : > { %v2196_v22 = vmax.f32 %v2164_v62, 0.0  ;;  %v3334_v25 = vadd.f32 %v3268_v39, %v4474_v43  ;;  %v1996_v5 = vpop.f32.mrb[29].mxu1 }
 0x2e8   : > { %v2194_v0 = vmax.f32 %v2162_v32, 0.0  ;;  %v3335_v7 = vadd.f32 %v1996_v5, %v4476_v41  ;;  %v3269_v55 = vpop.f32.mrb[30].mxu1 }
 0x2e9   : > { %v2222_v18 = vpack.c.bf16 %v2196_v22, %v2195_v21  ;;  %v2128_v36 = vmul.f32 %v3334_v25, %v4485_v46  ;;  %v3336_v35 = vadd.f32 %v3269_v55, %v4478_v40  ;;  %v1999_v24 = vpop.f32.mrb[31].mxu1 }
 0x2ea   : > { %v2221_v42 = vpack.c.bf16 %v2194_v0, %v2193_v15  ;;  %v2126_v63 = vmul.f32 %v3335_v7, %v4485_v46  ;;  %v3337_v50 = vadd.f32 %v1999_v24, %v4480_v26 }
 0x2eb   : > { %v2167_v6 = vadd.f32 %v4490_v29, %v2128_v36  ;;  %v2129_v43 = vmul.f32 %v3336_v35, %v4485_v46 }
 0x2ec   : > { %v2165_v48 = vadd.f32 %v4490_v29, %v2126_v63  ;;  %v2127_v41 = vmul.f32 %v3337_v50, %v4485_v46  ;;  %3296 = vmatprep.mubr.msk.bf16.mxu0 %vm1263_vm5, %v2221_v42 }
 0x2ed   : > { %v2168_v49 = vadd.f32 %v4490_v29, %v2129_v43  ;;  %3297 = vmatmul.mubr.msk.bf16.gmra.mrb[56].mxu0 %vm1263_vm5, %v2222_v18  ;;  %v2199_v16 = vmax.f32 %v2167_v6, 0.0 }
 0x2ee   : > { %v2166_v40 = vadd.f32 %v4490_v29, %v2127_v41  ;;  %v3272_v14 = vpop.f32.mrb[0].mxu1  ;;  %v2197_v12 = vmax.f32 %v2165_v48, 0.0 }
 0x2ef   : > { %v2200_v2 = vmax.f32 %v2168_v49, 0.0  ;;  %v2132_v26 = vmul.f32 %v3272_v14, %v4485_v46  ;;  %v2012_v44 = vpop.f32.mrb[1].mxu1 }
 0x2f0   : > { %v2198_v61 = vmax.f32 %v2166_v40, 0.0  ;;  %v2130_v60 = vmul.f32 %v4485_v46, %v2012_v44  ;;  %v3273_v13 = vpop.f32.mrb[2].mxu1 }
 0x2f1   : > { %v2224_v19 = vpack.c.bf16 %v2200_v2, %v2199_v16  ;;  %v2171_v11 = vadd.f32 %v4490_v29, %v2132_v26  ;;  %v2133_v45 = vmul.f32 %v3273_v13, %v4485_v46  ;;  %v2015_v47 = vpop.f32.mrb[3].mxu1 }
 0x2f2   : > { %v2223_v38 = vpack.c.bf16 %v2198_v61, %v2197_v12  ;;  %v2169_v4 = vadd.f32 %v4490_v29, %v2130_v60  ;;  %v2131_v59 = vmul.f32 %v4485_v46, %v2015_v47 }
 0x2f3   : > { %v2172_v23 = vadd.f32 %v4490_v29, %v2133_v45  ;;  %v2203_v31 = vmax.f32 %v2171_v11, 0.0 }
 0x2f4   : > { %v2170_v57 = vadd.f32 %v4490_v29, %v2131_v59  ;;  %3300 = vmatprep.mubr.msk.bf16.mxu0 %vm1263_vm5, %v2223_v38  ;;  %v2201_v37 = vmax.f32 %v2169_v4, 0.0 }
 0x2f5   : > { %v2204_v34 = vmax.f32 %v2172_v23, 0.0  ;;  %3301 = vmatmul.mubr.msk.bf16.gmra.mrb[60].mxu0 %vm1263_vm5, %v2224_v19 }
 0x2f6   : > { %v2202_v1 = vmax.f32 %v2170_v57, 0.0  ;;  %v3276_v10 = vpop.f32.mrb[4].mxu1 }
 0x2f7   : > { %v2226_v58 = vpack.c.bf16 %v2204_v34, %v2203_v31  ;;  %v2136_v51 = vmul.f32 %v3276_v10, %v4485_v46  ;;  %v2028_v56 = vpop.f32.mrb[5].mxu1  ;;  %v3614_v31 = vld [vmem:[%s3741_s22 + $0x8] sm:$0xff]  }
 0x2f8   : > { %v2225_v30 = vpack.c.bf16 %v2202_v1, %v2201_v37  ;;  %v2134_v28 = vmul.f32 %v4485_v46, %v2028_v56  ;;  %v3277_v33 = vpop.f32.mrb[6].mxu1  ;;  %v2527_v34 = vunpack.c.l.bf16 %v3614_v31  ;;  %v3615_v1 = vld [vmem:[%s3741_s22] sm:$0xff]  }
 0x2f9   : > { %v2175_v17 = vadd.f32 %v4490_v29, %v2136_v51  ;;  %v2137_v8 = vmul.f32 %v3277_v33, %v4485_v46  ;;  %v2031_v53 = vpop.f32.mrb[7].mxu1  ;;  %v2525_v10 = vunpack.c.l.bf16 %v3615_v1 }
 0x2fa   : > { %v2173_v54 = vadd.f32 %v4490_v29, %v2134_v28  ;;  %v2135_v20 = vmul.f32 %v4485_v46, %v2031_v53  ;;  %3304 = vmatprep.mubr.msk.bf16.mxu0 %vm1263_vm5, %v2225_v30  ;;  %v2528_v28 = vunpack.c.h.bf16 %v3614_v31  ;;  %v3619_v31 = vld [vmem:[%s3741_s22 + $0x20] sm:$0xff]  }
 0x2fb   : > { %v2176_v9 = vadd.f32 %v4490_v29, %v2137_v8  ;;  %v2207_v3 = vmax.f32 %v2175_v17, 0.0  ;;  %v2526_v17 = vunpack.c.h.bf16 %v3615_v1 }
 0x2fc   : > { %v2174_v52 = vadd.f32 %v4490_v29, %v2135_v20  ;;  %v2205_v62 = vmax.f32 %v2173_v54, 0.0 }
 0x2fd   : > { %v2208_v27 = vmax.f32 %v2176_v9, 0.0  ;;  %3305 = vmatmul.mubr.msk.bf16.gmra.mrb[64].mxu0 %vm1263_vm5, %v2226_v58 }
 0x2fe   : > { %v2206_v32 = vmax.f32 %v2174_v52, 0.0  ;;  %v3280_v39 = vpop.f32.mrb[8].mxu1 }
 0x2ff   : > { %v2228_v21 = vpack.c.bf16 %v2208_v27, %v2207_v3  ;;  %v2140_v22 = vmul.f32 %v3280_v39, %v4485_v46  ;;  %v2044_v25 = vpop.f32.mrb[9].mxu1 }
 0x300   : > { %v2227_v5 = vpack.c.bf16 %v2206_v32, %v2205_v62  ;;  %v2138_v15 = vmul.f32 %v4485_v46, %v2044_v25  ;;  %v3281_v0 = vpop.f32.mrb[10].mxu1 }
 0x301   : > { %v2179_v7 = vadd.f32 %v4490_v29, %v2140_v22  ;;  %v2141_v55 = vmul.f32 %v3281_v0, %v4485_v46  ;;  %v2047_v18 = vpop.f32.mrb[11].mxu1 }
 0x302   : > { %v2177_v36 = vadd.f32 %v4490_v29, %v2138_v15  ;;  %v2139_v35 = vmul.f32 %v4485_v46, %v2047_v18  ;;  %3308 = vmatprep.mubr.msk.bf16.mxu0 %vm1263_vm5, %v2227_v5  ;;  %v3616_v5 = vld [vmem:[%s3741_s22 + $0x18] sm:$0xff]  }
 0x303   : > { %v2180_v24 = vadd.f32 %v4490_v29, %v2141_v55  ;;  %v2211_v63 = vmax.f32 %v2179_v7, 0.0  ;;  %v2531_v15 = vunpack.c.l.bf16 %v3616_v5 }
 0x304   : > { %v2178_v42 = vadd.f32 %v4490_v29, %v2139_v35  ;;  %v2209_v6 = vmax.f32 %v2177_v36, 0.0  ;;  %v3617_v36 = vld [vmem:[%s3741_s22 + $0x10] sm:$0xff]  }
 0x305   : > { %v2212_v50 = vmax.f32 %v2180_v24, 0.0  ;;  %3309 = vmatmul.mubr.msk.bf16.gmra.mrb[68].mxu0 %vm1263_vm5, %v2228_v21  ;;  %v2529_v35 = vunpack.c.l.bf16 %v3617_v36 }
 0x306   : > { %v2210_v43 = vmax.f32 %v2178_v42, 0.0  ;;  %v3284_v48 = vpop.f32.mrb[12].mxu1 }
 0x307   : > { %v2230_v41 = vpack.c.bf16 %v2212_v50, %v2211_v63  ;;  %v2144_v49 = vmul.f32 %v3284_v48, %v4485_v46  ;;  %v2060_v40 = vpop.f32.mrb[13].mxu1 }
 0x308   : > { %v2229_v14 = vpack.c.bf16 %v2210_v43, %v2209_v6  ;;  %v2142_v16 = vmul.f32 %v4485_v46, %v2060_v40  ;;  %v3285_v2 = vpop.f32.mrb[14].mxu1  ;;  %v2532_v6 = vunpack.c.h.bf16 %v3616_v5  ;;  %v2530_v40 = vunpack.c.h.bf16 %v3617_v36 }
 0x309   : > { %v2183_v26 = vadd.f32 %v4490_v29, %v2144_v49  ;;  %v2145_v44 = vmul.f32 %v3285_v2, %v4485_v46  ;;  %v2063_v12 = vpop.f32.mrb[15].mxu1 }
 0x30a   : > { %v2181_v61 = vadd.f32 %v4490_v29, %v2142_v16  ;;  %v2143_v60 = vmul.f32 %v4485_v46, %v2063_v12  ;;  %3312 = vmatprep.mubr.msk.bf16.mxu0 %vm1263_vm5, %v2229_v14  ;;  %v4579_v46 = vld [vmem:[%s4754_s8] ss:$0 sm:$0xff] }
 0x30b   : > { %v2184_v13 = vadd.f32 %v4490_v29, %v2145_v44  ;;  %v2215_v11 = vmax.f32 %v2183_v26, 0.0 }
 0x30c   : > { %v2182_v19 = vadd.f32 %v4490_v29, %v2143_v60  ;;  %v2213_v47 = vmax.f32 %v2181_v61, 0.0  ;;  %v4584_v29 = vld [vmem:[%s4755_s9] ss:$0 sm:$0xff] }
 0x30d   : > { %v2216_v45 = vmax.f32 %v2184_v13, 0.0  ;;  %3313 = vmatmul.mubr.msk.bf16.gmra.mrb[72].mxu0 %vm1263_vm5, %v2230_v41 }
 0x30e   : > { %v2214_v38 = vmax.f32 %v2182_v19, 0.0 }
 0x30f   : > { %v2232_v4 = vpack.c.bf16 %v2216_v45, %v2215_v11 }
 0x310   : > { %v2231_v59 = vpack.c.bf16 %v2214_v38, %v2213_v47  ;;  %v3618_v47 = vld [vmem:[%s3741_s22 + $0x28] sm:$0xff]  }
 0x311   : > { %v2535_v38 = vunpack.c.l.bf16 %v3618_v47 }
 0x312   : > { %3316 = vmatprep.mubr.msk.bf16.mxu0 %vm1263_vm5, %v2231_v59 }
 0x315   : > { %3317 = vmatmul.mubr.msk.bf16.gmra.mrb[76].mxu0 %vm1263_vm5, %v2232_v4 }
 0x3b0   : > { %v3290_v23 = vpop.f32.mrb[48].mxu0 }
 0x3b1   : > { %v2456_v57 = vmul.f32 %v3290_v23, %v4579_v46  ;;  %v2320_v37 = vpop.f32.mrb[49].mxu0 }
 0x3b2   : > { %v2454_v58 = vmul.f32 %v4579_v46, %v2320_v37  ;;  %v3291_v51 = vpop.f32.mrb[50].mxu0 }
 0x3b3   : > { %v2495_v56 = vadd.f32 %v4584_v29, %v2456_v57  ;;  %v2457_v30 = vmul.f32 %v3291_v51, %v4579_v46  ;;  %v2323_v33 = vpop.f32.mrb[51].mxu0  ;;  %v2536_v51 = vunpack.c.h.bf16 %v3618_v47 }
 0x3b4   : > { %v2493_v8 = vadd.f32 %v4584_v29, %v2454_v58  ;;  %v2455_v53 = vmul.f32 %v4579_v46, %v2323_v33 }
 0x3b5   : > { %v2559_v54 = vadd.f32 %v2527_v34, %v2495_v56  ;;  %v2496_v20 = vadd.f32 %v4584_v29, %v2457_v30  ;;  %v2533_v34 = vunpack.c.l.bf16 %v3619_v31 }
 0x3b6   : > { %v2557_v9 = vadd.f32 %v2525_v10, %v2493_v8  ;;  %v2494_v52 = vadd.f32 %v4584_v29, %v2455_v53 }
 0x3b7   : > { %v2591_v3 = vmax.f32 %v2559_v54, 0.0  ;;  %v2560_v27 = vadd.f32 %v2528_v28, %v2496_v20 }
 0x3b8   : > { %v2589_v62 = vmax.f32 %v2557_v9, 0.0  ;;  %v2558_v32 = vadd.f32 %v2526_v17, %v2494_v52  ;;  %v3294_v39 = vpop.f32.mrb[52].mxu0  ;;  %v2534_v17 = vunpack.c.h.bf16 %v3619_v31 }
 0x3b9   : > { %v3035_v21 = vpack.c.bf16 %v2591_v3, %v2591_v3  ;;  %v2592_v22 = vmax.f32 %v2560_v27, 0.0  ;;  %v2460_v25 = vmul.f32 %v3294_v39, %v4579_v46  ;;  %v2336_v0 = vpop.f32.mrb[53].mxu0 }
 0x3ba   : > { %v3033_v7 = vpack.c.bf16 %v2589_v62, %v2589_v62  ;;  %v2590_v55 = vmax.f32 %v2558_v32, 0.0  ;;  %v2458_v18 = vmul.f32 %v4579_v46, %v2336_v0  ;;  %v3295_v24 = vpop.f32.mrb[54].mxu0 }
 0x3bb   : > { %2752 = vst.msk [vmem:[%s4601_s17 + $0x8] sm:$0xf] %vm2749_vm8, %v3035_v21  ;;  %v3036_v42 = vpack.c.bf16 %v2592_v22, %v2592_v22  ;;  %v2499_v63 = vadd.f32 %v4584_v29, %v2460_v25  ;;  %v2461_v50 = vmul.f32 %v3295_v24, %v4579_v46  ;;  %v2339_v43 = vpop.f32.mrb[55].mxu0  ;;  %v3620_v22 = vld [vmem:[%s3741_s22 + $0x38] sm:$0xff]  }
 0x3bc   : > { %2750 = vst.msk [vmem:[%s4601_s17] sm:$0xf] %vm2749_vm8, %v3033_v7  ;;  %v3034_v48 = vpack.c.bf16 %v2590_v55, %v2590_v55  ;;  %v2497_v41 = vadd.f32 %v4584_v29, %v2458_v18  ;;  %v2459_v49 = vmul.f32 %v4579_v46, %v2339_v43  ;;  %v2539_v25 = vunpack.c.l.bf16 %v3620_v22  ;;  %v3621_v55 = vld [vmem:[%s3741_s22 + $0x30] sm:$0xff]  }
 0x3bd   : > { %2753 = vst.msk [vmem:[%s4601_s17 + $0xc] sm:$0xf] %vm2749_vm8, %v3036_v42  ;;  %v2563_v14 = vadd.f32 %v2531_v15, %v2499_v63  ;;  %v2500_v16 = vadd.f32 %v4584_v29, %v2461_v50  ;;  %v2537_v18 = vunpack.c.l.bf16 %v3621_v55  ;;  %v2540_v63 = vunpack.c.h.bf16 %v3620_v22 }
 0x3be   : > { %2751 = vst.msk [vmem:[%s4601_s17 + $0x4] sm:$0xf] %vm2749_vm8, %v3034_v48  ;;  %v2561_v2 = vadd.f32 %v2529_v35, %v2497_v41  ;;  %v2498_v26 = vadd.f32 %v4584_v29, %v2459_v49  ;;  %v2538_v41 = vunpack.c.h.bf16 %v3621_v55 }
 0x3bf   : > { %v2595_v44 = vmax.f32 %v2563_v14, 0.0  ;;  %v2564_v12 = vadd.f32 %v2532_v6, %v2500_v16 }
 0x3c0   : > { %v2593_v61 = vmax.f32 %v2561_v2, 0.0  ;;  %v2562_v60 = vadd.f32 %v2530_v40, %v2498_v26  ;;  %v3298_v13 = vpop.f32.mrb[56].mxu0 }
 0x3c1   : > { %v3039_v19 = vpack.c.bf16 %v2595_v44, %v2595_v44  ;;  %v2596_v11 = vmax.f32 %v2564_v12, 0.0  ;;  %v2464_v45 = vmul.f32 %v3298_v13, %v4579_v46  ;;  %v2352_v4 = vpop.f32.mrb[57].mxu0 }
 0x3c2   : > { %v3037_v59 = vpack.c.bf16 %v2593_v61, %v2593_v61  ;;  %v2594_v23 = vmax.f32 %v2562_v60, 0.0  ;;  %v2462_v57 = vmul.f32 %v4579_v46, %v2352_v4  ;;  %v3299_v37 = vpop.f32.mrb[58].mxu0 }
 0x3c3   : > { %2756 = vst.msk [vmem:[%s4601_s17 + $0x18] sm:$0xf] %vm2749_vm8, %v3039_v19  ;;  %v3040_v1 = vpack.c.bf16 %v2596_v11, %v2596_v11  ;;  %v2503_v10 = vadd.f32 %v4584_v29, %v2464_v45  ;;  %v2465_v58 = vmul.f32 %v3299_v37, %v4579_v46  ;;  %v2355_v56 = vpop.f32.mrb[59].mxu0  ;;  %v3622_v11 = vld [vmem:[%s3741_s22 + $0x48] sm:$0xff]  }
 0x3c4   : > { %2754 = vst.msk [vmem:[%s4601_s17 + $0x10] sm:$0xf] %vm2749_vm8, %v3037_v59  ;;  %v3038_v30 = vpack.c.bf16 %v2594_v23, %v2594_v23  ;;  %v2501_v28 = vadd.f32 %v4584_v29, %v2462_v57  ;;  %v2463_v33 = vmul.f32 %v4579_v46, %v2355_v56  ;;  %v2543_v45 = vunpack.c.l.bf16 %v3622_v11  ;;  %v3623_v23 = vld [vmem:[%s3741_s22 + $0x40] sm:$0xff]  }
 0x3c5   : > { %2757 = vst.msk [vmem:[%s4601_s17 + $0x1c] sm:$0xf] %vm2749_vm8, %v3040_v1  ;;  %v2567_v8 = vadd.f32 %v2535_v38, %v2503_v10  ;;  %v2504_v53 = vadd.f32 %v4584_v29, %v2465_v58  ;;  %v2541_v57 = vunpack.c.l.bf16 %v3623_v23  ;;  %v2544_v10 = vunpack.c.h.bf16 %v3622_v11 }
 0x3c6   : > { %2755 = vst.msk [vmem:[%s4601_s17 + $0x14] sm:$0xf] %vm2749_vm8, %v3038_v30  ;;  %v2565_v54 = vadd.f32 %v2533_v34, %v2501_v28  ;;  %v2502_v20 = vadd.f32 %v4584_v29, %v2463_v33  ;;  %v2542_v28 = vunpack.c.h.bf16 %v3623_v23 }
 0x3c7   : > { %v2599_v9 = vmax.f32 %v2567_v8, 0.0  ;;  %v2568_v52 = vadd.f32 %v2536_v51, %v2504_v53 }
 0x3c8   : > { %v2597_v3 = vmax.f32 %v2565_v54, 0.0  ;;  %v2566_v27 = vadd.f32 %v2534_v17, %v2502_v20  ;;  %v3302_v62 = vpop.f32.mrb[60].mxu0 }
 0x3c9   : > { %v3043_v32 = vpack.c.bf16 %v2599_v9, %v2599_v9  ;;  %v2600_v39 = vmax.f32 %v2568_v52, 0.0  ;;  %v2468_v21 = vmul.f32 %v3302_v62, %v4579_v46  ;;  %v2368_v5 = vpop.f32.mrb[61].mxu0 }
 0x3ca   : > { %v3041_v15 = vpack.c.bf16 %v2597_v3, %v2597_v3  ;;  %v2598_v0 = vmax.f32 %v2566_v27, 0.0  ;;  %v2466_v7 = vmul.f32 %v4579_v46, %v2368_v5  ;;  %v3303_v36 = vpop.f32.mrb[62].mxu0 }
 0x3cb   : > { %2760 = vst.msk [vmem:[%s4601_s17 + $0x28] sm:$0xf] %vm2749_vm8, %v3043_v32  ;;  %v3044_v35 = vpack.c.bf16 %v2600_v39, %v2600_v39  ;;  %v2507_v24 = vadd.f32 %v4584_v29, %v2468_v21  ;;  %v2469_v42 = vmul.f32 %v3303_v36, %v4579_v46  ;;  %v2371_v50 = vpop.f32.mrb[63].mxu0  ;;  %v3624_v39 = vld [vmem:[%s3741_s22 + $0x58] sm:$0xff]  }
 0x3cc   : > { %2758 = vst.msk [vmem:[%s4601_s17 + $0x20] sm:$0xf] %vm2749_vm8, %v3041_v15  ;;  %v3042_v6 = vpack.c.bf16 %v2598_v0, %v2598_v0  ;;  %v2505_v43 = vadd.f32 %v4584_v29, %v2466_v7  ;;  %v2467_v48 = vmul.f32 %v4579_v46, %v2371_v50  ;;  %v2547_v21 = vunpack.c.l.bf16 %v3624_v39  ;;  %v3625_v0 = vld [vmem:[%s3741_s22 + $0x50] sm:$0xff]  }
 0x3cd   : > { %2761 = vst.msk [vmem:[%s4601_s17 + $0x2c] sm:$0xf] %vm2749_vm8, %v3044_v35  ;;  %v2571_v49 = vadd.f32 %v2539_v25, %v2507_v24  ;;  %v2508_v40 = vadd.f32 %v4584_v29, %v2469_v42  ;;  %v2545_v7 = vunpack.c.l.bf16 %v3625_v0  ;;  %v2548_v24 = vunpack.c.h.bf16 %v3624_v39 }
 0x3ce   : > { %2759 = vst.msk [vmem:[%s4601_s17 + $0x24] sm:$0xf] %vm2749_vm8, %v3042_v6  ;;  %v2569_v14 = vadd.f32 %v2537_v18, %v2505_v43  ;;  %v2506_v16 = vadd.f32 %v4584_v29, %v2467_v48  ;;  %v2546_v43 = vunpack.c.h.bf16 %v3625_v0 }
 0x3cf   : > { %v2603_v2 = vmax.f32 %v2571_v49, 0.0  ;;  %v2572_v26 = vadd.f32 %v2540_v63, %v2508_v40 }
 0x3d0   : > { %v2601_v44 = vmax.f32 %v2569_v14, 0.0  ;;  %v2570_v12 = vadd.f32 %v2538_v41, %v2506_v16  ;;  %v3306_v61 = vpop.f32.mrb[64].mxu0 }
 0x3d1   : > { %v3047_v60 = vpack.c.bf16 %v2603_v2, %v2603_v2  ;;  %v2604_v13 = vmax.f32 %v2572_v26, 0.0  ;;  %v2472_v19 = vmul.f32 %v3306_v61, %v4579_v46  ;;  %v2384_v47 = vpop.f32.mrb[65].mxu0 }
 0x3d2   : > { %v3045_v38 = vpack.c.bf16 %v2601_v44, %v2601_v44  ;;  %v2602_v4 = vmax.f32 %v2570_v12, 0.0  ;;  %v2470_v59 = vmul.f32 %v4579_v46, %v2384_v47  ;;  %v3307_v31 = vpop.f32.mrb[66].mxu0 }
 0x3d3   : > { %2764 = vst.msk [vmem:[%s4601_s17 + $0x38] sm:$0xf] %vm2749_vm8, %v3047_v60  ;;  %v3048_v34 = vpack.c.bf16 %v2604_v13, %v2604_v13  ;;  %v2511_v37 = vadd.f32 %v4584_v29, %v2472_v19  ;;  %v2473_v1 = vmul.f32 %v3307_v31, %v4579_v46  ;;  %v2387_v58 = vpop.f32.mrb[67].mxu0  ;;  %v3626_v13 = vld [vmem:[%s3741_s22 + $0x68] sm:$0xff]  }
 0x3d4   : > { %2762 = vst.msk [vmem:[%s4601_s17 + $0x30] sm:$0xf] %vm2749_vm8, %v3045_v38  ;;  %v3046_v51 = vpack.c.bf16 %v2602_v4, %v2602_v4  ;;  %v2509_v56 = vadd.f32 %v4584_v29, %v2470_v59  ;;  %v2471_v30 = vmul.f32 %v4579_v46, %v2387_v58  ;;  %v2551_v19 = vunpack.c.l.bf16 %v3626_v13  ;;  %v3627_v4 = vld [vmem:[%s3741_s22 + $0x60] sm:$0xff]  }
 0x3d5   : > { %2765 = vst.msk [vmem:[%s4601_s17 + $0x3c] sm:$0xf] %vm2749_vm8, %v3048_v34  ;;  %v2575_v33 = vadd.f32 %v2543_v45, %v2511_v37  ;;  %v2512_v17 = vadd.f32 %v4584_v29, %v2473_v1  ;;  %v2549_v59 = vunpack.c.l.bf16 %v3627_v4  ;;  %v2552_v37 = vunpack.c.h.bf16 %v3626_v13 }
 0x3d6   : > { %2763 = vst.msk [vmem:[%s4601_s17 + $0x34] sm:$0xf] %vm2749_vm8, %v3046_v51  ;;  %v2573_v8 = vadd.f32 %v2541_v57, %v2509_v56  ;;  %v2510_v53 = vadd.f32 %v4584_v29, %v2471_v30  ;;  %v2550_v56 = vunpack.c.h.bf16 %v3627_v4 }
 0x3d7   : > { %v2607_v54 = vmax.f32 %v2575_v33, 0.0  ;;  %v2576_v20 = vadd.f32 %v2544_v10, %v2512_v17 }
 0x3d8   : > { %v2605_v9 = vmax.f32 %v2573_v8, 0.0  ;;  %v2574_v52 = vadd.f32 %v2542_v28, %v2510_v53  ;;  %v3310_v3 = vpop.f32.mrb[68].mxu0 }
 0x3d9   : > { %v3051_v27 = vpack.c.bf16 %v2607_v54, %v2607_v54  ;;  %v2608_v62 = vmax.f32 %v2576_v20, 0.0  ;;  %v2476_v32 = vmul.f32 %v3310_v3, %v4579_v46  ;;  %v2400_v22 = vpop.f32.mrb[69].mxu0 }
 0x3da   : > { %v3049_v25 = vpack.c.bf16 %v2605_v9, %v2605_v9  ;;  %v2606_v5 = vmax.f32 %v2574_v52, 0.0  ;;  %v2474_v15 = vmul.f32 %v4579_v46, %v2400_v22  ;;  %v3311_v55 = vpop.f32.mrb[70].mxu0 }
 0x3db   : > { %2768 = vst.msk [vmem:[%s4601_s17 + $0x48] sm:$0xf] %vm2749_vm8, %v3051_v27  ;;  %v3052_v18 = vpack.c.bf16 %v2608_v62, %v2608_v62  ;;  %v2515_v36 = vadd.f32 %v4584_v29, %v2476_v32  ;;  %v2477_v35 = vmul.f32 %v3311_v55, %v4579_v46  ;;  %v2403_v42 = vpop.f32.mrb[71].mxu0  ;;  %v3628_v62 = vld [vmem:[%s3741_s22 + $0x78] sm:$0xff]  }
 0x3dc   : > { %2766 = vst.msk [vmem:[%s4601_s17 + $0x40] sm:$0xf] %vm2749_vm8, %v3049_v25  ;;  %v3050_v63 = vpack.c.bf16 %v2606_v5, %v2606_v5  ;;  %v2513_v50 = vadd.f32 %v4584_v29, %v2474_v15  ;;  %v2475_v6 = vmul.f32 %v4579_v46, %v2403_v42  ;;  %v2555_v32 = vunpack.c.l.bf16 %v3628_v62  ;;  %v3629_v5 = vld [vmem:[%s3741_s22 + $0x70] sm:$0xff]  }
 0x3dd   : > { %2769 = vst.msk [vmem:[%s4601_s17 + $0x4c] sm:$0xf] %vm2749_vm8, %v3052_v18  ;;  %v2579_v48 = vadd.f32 %v2547_v21, %v2515_v36  ;;  %v2516_v41 = vadd.f32 %v4584_v29, %v2477_v35  ;;  %v2553_v15 = vunpack.c.l.bf16 %v3629_v5  ;;  %v2556_v36 = vunpack.c.h.bf16 %v3628_v62 }
 0x3de   : > { %2767 = vst.msk [vmem:[%s4601_s17 + $0x44] sm:$0xf] %vm2749_vm8, %v3050_v63  ;;  %v2577_v49 = vadd.f32 %v2545_v7, %v2513_v50  ;;  %v2514_v40 = vadd.f32 %v4584_v29, %v2475_v6  ;;  %v2554_v50 = vunpack.c.h.bf16 %v3629_v5 }
 0x3df   : > { %v2611_v14 = vmax.f32 %v2579_v48, 0.0  ;;  %v2580_v16 = vadd.f32 %v2548_v24, %v2516_v41 }
 0x3e0   : > { %v2609_v2 = vmax.f32 %v2577_v49, 0.0  ;;  %v2578_v26 = vadd.f32 %v2546_v43, %v2514_v40  ;;  %v3314_v44 = vpop.f32.mrb[72].mxu0 }
 0x3e1   : > { %v3055_v12 = vpack.c.bf16 %v2611_v14, %v2611_v14  ;;  %v2612_v61 = vmax.f32 %v2580_v16, 0.0  ;;  %v2480_v60 = vmul.f32 %v3314_v44, %v4579_v46  ;;  %v2416_v11 = vpop.f32.mrb[73].mxu0 }
 0x3e2   : > { %v3053_v45 = vpack.c.bf16 %v2609_v2, %v2609_v2  ;;  %v2610_v47 = vmax.f32 %v2578_v26, 0.0  ;;  %v2478_v38 = vmul.f32 %v4579_v46, %v2416_v11  ;;  %v3315_v23 = vpop.f32.mrb[74].mxu0 }
 0x3e3   : > { %2772 = vst.msk [vmem:[%s4601_s17 + $0x58] sm:$0xf] %vm2749_vm8, %v3055_v12  ;;  %v3056_v57 = vpack.c.bf16 %v2612_v61, %v2612_v61  ;;  %v2519_v31 = vadd.f32 %v4584_v29, %v2480_v60  ;;  %v2481_v34 = vmul.f32 %v3315_v23, %v4579_v46  ;;  %v2419_v1 = vpop.f32.mrb[75].mxu0 }
 0x3e4   : > { %2770 = vst.msk [vmem:[%s4601_s17 + $0x50] sm:$0xf] %vm2749_vm8, %v3053_v45  ;;  %v3054_v10 = vpack.c.bf16 %v2610_v47, %v2610_v47  ;;  %v2517_v58 = vadd.f32 %v4584_v29, %v2478_v38  ;;  %v2479_v51 = vmul.f32 %v4579_v46, %v2419_v1 }
 0x3e5   : > { %2773 = vst.msk [vmem:[%s4601_s17 + $0x5c] sm:$0xf] %vm2749_vm8, %v3056_v57  ;;  %v2583_v30 = vadd.f32 %v2551_v19, %v2519_v31  ;;  %v2520_v28 = vadd.f32 %v4584_v29, %v2481_v34 }
 0x3e6   : > { %2771 = vst.msk [vmem:[%s4601_s17 + $0x54] sm:$0xf] %vm2749_vm8, %v3054_v10  ;;  %v2581_v33 = vadd.f32 %v2549_v59, %v2517_v58  ;;  %v2518_v17 = vadd.f32 %v4584_v29, %v2479_v51 }
 0x3e7   : > { %v2615_v8 = vmax.f32 %v2583_v30, 0.0  ;;  %v2584_v53 = vadd.f32 %v2552_v37, %v2520_v28 }
 0x3e8   : > { %v2613_v54 = vmax.f32 %v2581_v33, 0.0  ;;  %v2582_v20 = vadd.f32 %v2550_v56, %v2518_v17  ;;  %v3318_v9 = vpop.f32.mrb[76].mxu0 }
 0x3e9   : > { %v3059_v52 = vpack.c.bf16 %v2615_v8, %v2615_v8  ;;  %v2616_v3 = vmax.f32 %v2584_v53, 0.0  ;;  %v2484_v27 = vmul.f32 %v3318_v9, %v4579_v46  ;;  %v2432_v39 = vpop.f32.mrb[77].mxu0 }
 0x3ea   : > { %v3057_v21 = vpack.c.bf16 %v2613_v54, %v2613_v54  ;;  %v2614_v22 = vmax.f32 %v2582_v20, 0.0  ;;  %v2482_v25 = vmul.f32 %v4579_v46, %v2432_v39  ;;  %v3319_v0 = vpop.f32.mrb[78].mxu0 }
 0x3eb   : > { %2776 = vst.msk [vmem:[%s4601_s17 + $0x68] sm:$0xf] %vm2749_vm8, %v3059_v52  ;;  %v3060_v7 = vpack.c.bf16 %v2616_v3, %v2616_v3  ;;  %v2523_v55 = vadd.f32 %v4584_v29, %v2484_v27  ;;  %v2485_v18 = vmul.f32 %v3319_v0, %v4579_v46  ;;  %v2435_v35 = vpop.f32.mrb[79].mxu0 }
 0x3ec   : > { %2774 = vst.msk [vmem:[%s4601_s17 + $0x60] sm:$0xf] %vm2749_vm8, %v3057_v21  ;;  %v3058_v24 = vpack.c.bf16 %v2614_v22, %v2614_v22  ;;  %v2521_v42 = vadd.f32 %v4584_v29, %v2482_v25  ;;  %v2483_v63 = vmul.f32 %v4579_v46, %v2435_v35 }
 0x3ed   : > { %2777 = vst.msk [vmem:[%s4601_s17 + $0x6c] sm:$0xf] %vm2749_vm8, %v3060_v7  ;;  %v2587_v6 = vadd.f32 %v2555_v32, %v2523_v55  ;;  %v2524_v43 = vadd.f32 %v4584_v29, %v2485_v18 }
 0x3ee   : > { %2775 = vst.msk [vmem:[%s4601_s17 + $0x64] sm:$0xf] %vm2749_vm8, %v3058_v24  ;;  %v2585_v48 = vadd.f32 %v2553_v15, %v2521_v42  ;;  %v2522_v41 = vadd.f32 %v4584_v29, %v2483_v63 }
 0x3ef   : > { %v2619_v49 = vmax.f32 %v2587_v6, 0.0  ;;  %v2588_v40 = vadd.f32 %v2556_v36, %v2524_v43 }
 0x3f0   : > { %v2617_v14 = vmax.f32 %v2585_v48, 0.0  ;;  %v2586_v16 = vadd.f32 %v2554_v50, %v2522_v41 }
 0x3f1   : > { %v3063_v46 = vpack.c.bf16 %v2619_v49, %v2619_v49  ;;  %v2620_v2 = vmax.f32 %v2588_v40, 0.0 }
 0x3f2   : > { %v3061_v26 = vpack.c.bf16 %v2617_v14, %v2617_v14  ;;  %v2618_v44 = vmax.f32 %v2586_v16, 0.0 }
 0x3f3   : > { %2780 = vst.msk [vmem:[%s4601_s17 + $0x78] sm:$0xf] %vm2749_vm8, %v3063_v46  ;;  %v3064_v12 = vpack.c.bf16 %v2620_v2, %v2620_v2 }
 0x3f4   : > { %2778 = vst.msk [vmem:[%s4601_s17 + $0x70] sm:$0xf] %vm2749_vm8, %v3061_v26  ;;  %v3062_v61 = vpack.c.bf16 %v2618_v44, %v2618_v44 }
 0x3f5   : > { %2781 = vst.msk [vmem:[%s4601_s17 + $0x7c] sm:$0xf] %vm2749_vm8, %v3064_v12 }
 0x3f6   : > { %2779 = vst.msk [vmem:[%s4601_s17 + $0x74] sm:$0xf] %vm2749_vm8, %v3062_v61 }
 0x3f7 PF: > { %s20_s15 = sadd.s32 1, %s3652_s15   ;;  %s4823_s13 = smov %s3648_s14 }
 0x3f8   : > { %p17_p5 = scmp.ge.s32.totalorder %s20_s15, 4   ;;  %s4824_s14 = smov %s4826_s16 }
 0x3fa   :  { %19 = sbr.rel (!%p17_p5) target bundleno = 2 (0x2), region = 95 }

</bundles_post_ra>
